<compile_context>
chip_gen: v7x
topology: tpu7x:2x2x1
jax: 0.10.0
libtpu: 0.0.40
codegen_flags: <defaults>
</compile_context>

<pallas_src>
import functools

import jax
import jax.numpy as jnp
from jax.experimental import pallas as pl
from jax.experimental.pallas import tpu as pltpu

BN_EPS = 1e-3


def _same_pads(size, k, stride):
    """TF-SAME padding (Conv2dStaticSamePadding semantics)."""
    out = -(-size // stride)
    pad = max((out - 1) * stride + k - size, 0)
    return pad // 2, pad - pad // 2, out


# ---------------------------------------------------------------------------
# Fused MBConvBlock kernel: one grid step == one batch element.
#   xp_ref : (1, Hp, Wp, C)   padded NHWC input tile
#   dw_ref : (k*k, 1, C)      depthwise weights, BN1 scale folded in
#   b1_ref : (1, C)           BN1 bias
#   wr_ref : (se_c, C)        SE reduce weight    br_ref: (se_c, 1) bias
#   we_ref : (se_c, C)        SE expand weight    be_ref: (1, C)    bias
#   wp_ref : (C, Cout)        project weight, BN2 scale folded in
#   b2_ref : (1, Cout)        BN2 bias
#   o_ref  : (1, Cout, H*W)   channel-major (lane-dense) output
# ---------------------------------------------------------------------------
def _mbconv_kernel(xp_ref, dw_ref, b1_ref, wr_ref, br_ref, we_ref, be_ref,
                   wp_ref, b2_ref, o_ref, *, H, W, C, k, ph0, pw0, skip):
    # ---- depthwise kxk, stride 1 (in-kernel taps) + folded BN1 + swish -----
    acc = xp_ref[0, 0:H, 0:W, :] * dw_ref[0]
    for t in range(1, k * k):
        kh, kw = t // k, t % k
        acc = acc + xp_ref[0, kh:kh + H, kw:kw + W, :] * dw_ref[t]
    y = acc + b1_ref[...]                      # (H, W, C) + (1, C)
    y = y * jax.nn.sigmoid(y)                  # swish
    y2 = y.reshape(H * W, C)

    # ---- squeeze-and-excitation; gate computed once per (n, c) -------------
    s = jnp.mean(y2, axis=0, keepdims=True)                               # (1, C)
    r = jnp.sum(wr_ref[...] * s, axis=1, keepdims=True) + br_ref[...]     # (se_c, 1)
    r = r * jax.nn.sigmoid(r)                                             # swish
    e = jnp.sum(we_ref[...] * r, axis=0, keepdims=True) + be_ref[...]     # (1, C)
    g = jax.nn.sigmoid(e)                                                 # (1, C)

    # ---- SE gate fused into the project matmul (+ folded BN2) --------------
    out = jnp.dot(y2 * g, wp_ref[...], preferred_element_type=jnp.float32)
    out = out + b2_ref[...]                                               # (HW, Cout)

    if skip:  # identity skip, sliced from the padded tile already in VMEM
        out = out + xp_ref[0, ph0:ph0 + H, pw0:pw0 + W, :].reshape(H * W, C)

    # lane-dense channel-major store: (HW, Cout) -> (Cout, HW)
    o_ref[0] = out.T.astype(o_ref.dtype)


# ---------------------------------------------------------------------------
# Wrapper: NCHW in / NCHW out, eval-mode MBConvBlock.forward semantics.
# ---------------------------------------------------------------------------
def mbconv_block_forward(x_nchw, params, *, k=3, stride=1, id_skip=True):
    assert stride == 1  # TODO(synk): stride>1 needs strided in-kernel taps
    N, Cin, H, W = x_nchw.shape
    Cout = params["proj_w"].shape[1]
    se_c = params["se_red_w"].shape[0]

    ph0, ph1, Ho = _same_pads(H, k, stride)
    pw0, pw1, Wo = _same_pads(W, k, stride)
    Hp, Wp, HW = H + ph0 + ph1, W + pw0 + pw1, Ho * Wo

    # NCHW -> NHWC (channels on lanes) + TF-SAME pad: cheap one-shot glue.
    xp = jnp.pad(jnp.transpose(x_nchw, (0, 2, 3, 1)),
                 ((0, 0), (ph0, ph1), (pw0, pw1), (0, 0)))

    # Fold eval-mode BN scales into the conv weights.
    dw = (params["dw_w"] * params["bn1_scale"][None, :]).reshape(k * k, 1, Cin)
    wp = params["proj_w"] * params["bn2_scale"][None, :]
    b1 = params["bn1_bias"].reshape(1, Cin)
    br = params["se_red_b"].reshape(se_c, 1)
    be = params["se_exp_b"].reshape(1, Cin)
    b2 = params["bn2_bias"].reshape(1, Cout)

    skip = bool(id_skip) and stride == 1 and Cin == Cout

    def _full(shape):
        zero = (0,) * len(shape)
        return pl.BlockSpec(shape, lambda n: zero)

    kern = functools.partial(_mbconv_kernel, H=Ho, W=Wo, C=Cin, k=k,
                             ph0=ph0, pw0=pw0, skip=skip)
    out = pl.pallas_call(
        kern,
        out_shape=jax.ShapeDtypeStruct((N, Cout, HW), x_nchw.dtype),
        grid=(N,),
        in_specs=[
            pl.BlockSpec((1, Hp, Wp, Cin), lambda n: (n, 0, 0, 0)),  # padded tile
            _full((k * k, 1, Cin)),   # depthwise w (BN1-folded)
            _full((1, Cin)),          # BN1 bias
            _full((se_c, Cin)),       # SE reduce w
            _full((se_c, 1)),         # SE reduce b
            _full((se_c, Cin)),       # SE expand w
            _full((1, Cin)),          # SE expand b
            _full((Cin, Cout)),       # project w (BN2-folded)
            _full((1, Cout)),         # BN2 bias
        ],
        out_specs=pl.BlockSpec((1, Cout, HW), lambda n: (n, 0, 0)),
        compiler_params=pltpu.CompilerParams(
            dimension_semantics=("parallel",)),     # v7x: batch across both TCs
    )(xp, dw, b1, params["se_red_w"], br, params["se_exp_w"], be, wp, b2)

    # channel-major kernel output == NCHW; just restore the spatial dims.
    return out.reshape(N, Cout, Ho, Wo)


# ---------------------------------------------------------------------------
# Pure-JAX reference (same math, XLA ops) for a correctness sanity check.
# ---------------------------------------------------------------------------
def mbconv_reference(x_nchw, params, *, k=3, stride=1, id_skip=True):
    N, C, H, W = x_nchw.shape
    ph0, ph1, Ho = _same_pads(H, k, stride)
    pw0, pw1, Wo = _same_pads(W, k, stride)
    x = jnp.transpose(x_nchw, (0, 2, 3, 1))
    xp = jnp.pad(x, ((0, 0), (ph0, ph1), (pw0, pw1), (0, 0)))

    acc = jnp.zeros((N, Ho, Wo, C), jnp.float32)
    for kh in range(k):
        for kw in range(k):
            tap = xp[:, kh:kh + (Ho - 1) * stride + 1:stride,
                     kw:kw + (Wo - 1) * stride + 1:stride, :]
            acc = acc + tap * params["dw_w"][kh * k + kw]
    y = acc * params["bn1_scale"] + params["bn1_bias"]
    y = y * jax.nn.sigmoid(y)

    hp = jax.lax.Precision.HIGHEST
    s = jnp.mean(y, axis=(1, 2))                                         # (N, C)
    r = jnp.einsum("nc,jc->nj", s, params["se_red_w"], precision=hp) + params["se_red_b"]
    r = r * jax.nn.sigmoid(r)
    e = jnp.einsum("nj,jc->nc", r, params["se_exp_w"], precision=hp) + params["se_exp_b"]
    y = y * jax.nn.sigmoid(e)[:, None, None, :]

    out = jnp.einsum("nhwc,cd->nhwd", y, params["proj_w"], precision=hp)
    out = out * params["bn2_scale"] + params["bn2_bias"]
    Cout = out.shape[-1]
    if id_skip and stride == 1 and C == Cout:
        out = out + x
    return jnp.transpose(out, (0, 3, 1, 2))


# ---------------------------------------------------------------------------
# Deterministic synthetic parameters (torch layouts -> kernel layouts),
# eval-mode BN kept as separate scale/bias (folded inside the wrapper).
# ---------------------------------------------------------------------------
def init_mbconv_params(key, in_c, out_c, *, k=3, se_c=None):
    if se_c is None:
        se_c = max(1, in_c // 4)
    ks = jax.random.split(key, 8)

    def bn(kk, c):
        k1, k2, k3, k4 = jax.random.split(kk, 4)
        gamma = 1.0 + 0.1 * jax.random.normal(k1, (c,), jnp.float32)
        beta = 0.1 * jax.random.normal(k2, (c,), jnp.float32)
        mean = 0.1 * jax.random.normal(k3, (c,), jnp.float32)
        var = jax.random.uniform(k4, (c,), jnp.float32, minval=0.5, maxval=1.5)
        scale = gamma * jax.lax.rsqrt(var + BN_EPS)
        return scale, beta - mean * scale

    # torch-layout weights
    dw_t = jax.random.normal(ks[0], (in_c, 1, k, k), jnp.float32) / (k * k)     # depthwise
    red_t = jax.random.normal(ks[1], (se_c, in_c, 1, 1), jnp.float32) / jnp.sqrt(in_c)
    red_b = 0.1 * jax.random.normal(ks[2], (se_c,), jnp.float32)
    exp_t = jax.random.normal(ks[3], (in_c, se_c, 1, 1), jnp.float32) / jnp.sqrt(se_c)
    exp_b = 0.1 * jax.random.normal(ks[4], (in_c,), jnp.float32)
    proj_t = jax.random.normal(ks[5], (out_c, in_c, 1, 1), jnp.float32) / jnp.sqrt(in_c)
    bn1_scale, bn1_bias = bn(ks[6], in_c)
    bn2_scale, bn2_bias = bn(ks[7], out_c)

    return dict(
        dw_w=jnp.transpose(dw_t[:, 0], (1, 2, 0)).reshape(k * k, in_c),  # (k*k, C)
        bn1_scale=bn1_scale, bn1_bias=bn1_bias,
        se_red_w=red_t[:, :, 0, 0],                     # (se_c, C)
        se_red_b=red_b,
        se_exp_w=jnp.transpose(exp_t[:, :, 0, 0]),      # (se_c, C)
        se_exp_b=exp_b,
        proj_w=jnp.transpose(proj_t[:, :, 0, 0]),       # (C, Cout)
        bn2_scale=bn2_scale, bn2_bias=bn2_bias,
    )


if __name__ == "__main__":
    root = jax.random.PRNGKey(0)
    kx, kb1, kb2 = jax.random.split(root, 3)

    N, C, H, W = 2, 32, 16, 16
    x = jax.random.normal(kx, (N, C, H, W), jnp.float32)

    # identity-skip block (stride 1, in_c == out_c) and a channel-changing block
    p_skip = init_mbconv_params(kb1, in_c=C, out_c=C, k=3, se_c=8)
    p_wide = init_mbconv_params(kb2, in_c=C, out_c=64, k=3, se_c=8)

    fwd = jax.jit(mbconv_block_forward, static_argnames=("k", "stride", "id_skip"))

    y_skip = jax.block_until_ready(fwd(x, p_skip, k=3, stride=1, id_skip=True))
    y_wide = jax.block_until_ready(fwd(x, p_wide, k=3, stride=1, id_skip=True))

    assert y_skip.shape == (N, C, H, W)
    assert y_wide.shape == (N, 64, H, W)

    r_skip = mbconv_reference(x, p_skip, k=3, stride=1, id_skip=True)
    r_wide = mbconv_reference(x, p_wide, k=3, stride=1, id_skip=True)
    assert jnp.allclose(y_skip, r_skip, rtol=5e-3, atol=5e-3)
    assert jnp.allclose(y_wide, r_wide, rtol=5e-3, atol=5e-3)

    print("KERNEL_OK")
</pallas_src>

<mosaic_0001>
module attributes {stable_mosaic.version = 11 : i64} {
  func.func @_mbconv_kernel(%arg0: i32, %arg1: memref<1x18x18x32xf32, #tpu.memory_space<vmem>>, %arg2: memref<9x1x32xf32, #tpu.memory_space<vmem>>, %arg3: memref<1x32xf32, #tpu.memory_space<vmem>>, %arg4: memref<8x32xf32, #tpu.memory_space<vmem>>, %arg5: memref<8x1xf32, #tpu.memory_space<vmem>>, %arg6: memref<8x32xf32, #tpu.memory_space<vmem>>, %arg7: memref<1x32xf32, #tpu.memory_space<vmem>>, %arg8: memref<32x32xf32, #tpu.memory_space<vmem>>, %arg9: memref<1x32xf32, #tpu.memory_space<vmem>>, %arg10: memref<1x32x256xf32, #tpu.memory_space<vmem>>) attributes {dimension_semantics = [#tpu.dimension_semantics<parallel>], iteration_bounds = array<i64: 2>, scalar_prefetch = 0 : i64, scratch_operands = 0 : i64, tpu.core_type = #tpu.core_type<tc>, window_params = [{transform_indices = @transform_0, window_bounds = array<i64: 1, 18, 18, 32>}, {pipeline_mode = #tpu.pipeline_mode<synchronous>, transform_indices = @transform_1, window_bounds = array<i64: 9, 1, 32>}, {pipeline_mode = #tpu.pipeline_mode<synchronous>, transform_indices = @transform_2, window_bounds = array<i64: 1, 32>}, {pipeline_mode = #tpu.pipeline_mode<synchronous>, transform_indices = @transform_3, window_bounds = array<i64: 8, 32>}, {pipeline_mode = #tpu.pipeline_mode<synchronous>, transform_indices = @transform_4, window_bounds = array<i64: 8, 1>}, {pipeline_mode = #tpu.pipeline_mode<synchronous>, transform_indices = @transform_5, window_bounds = array<i64: 8, 32>}, {pipeline_mode = #tpu.pipeline_mode<synchronous>, transform_indices = @transform_6, window_bounds = array<i64: 1, 32>}, {pipeline_mode = #tpu.pipeline_mode<synchronous>, transform_indices = @transform_7, window_bounds = array<i64: 32, 32>}, {pipeline_mode = #tpu.pipeline_mode<synchronous>, transform_indices = @transform_8, window_bounds = array<i64: 1, 32>}, {transform_indices = @transform_9, window_bounds = array<i64: 1, 32, 256>}]} {
    %c0 = arith.constant 0 : index
    %c0_0 = arith.constant 0 : index
    %c0_1 = arith.constant 0 : index
    %c0_2 = arith.constant 0 : index
    %0 = vector.load %arg1[%c0, %c0_0, %c0_1, %c0_2] : memref<1x18x18x32xf32, #tpu.memory_space<vmem>>, vector<1x16x16x32xf32>
    %1 = vector.shape_cast %0 : vector<1x16x16x32xf32> to vector<16x16x32xf32>
    %c0_3 = arith.constant 0 : index
    %c0_4 = arith.constant 0 : index
    %c0_5 = arith.constant 0 : index
    %2 = vector.load %arg2[%c0_3, %c0_4, %c0_5] : memref<9x1x32xf32, #tpu.memory_space<vmem>>, vector<1x1x32xf32>
    %3 = vector.shape_cast %2 : vector<1x1x32xf32> to vector<1x32xf32>
    %4 = vector.shape_cast %3 : vector<1x32xf32> to vector<1x1x32xf32>
    %5 = vector.broadcast %4 : vector<1x1x32xf32> to vector<16x16x32xf32>
    %6 = arith.mulf %1, %5 : vector<16x16x32xf32>
    %c0_6 = arith.constant 0 : index
    %c0_7 = arith.constant 0 : index
    %c1 = arith.constant 1 : index
    %c0_8 = arith.constant 0 : index
    %7 = vector.load %arg1[%c0_6, %c0_7, %c1, %c0_8] : memref<1x18x18x32xf32, #tpu.memory_space<vmem>>, vector<1x16x16x32xf32>
    %8 = vector.shape_cast %7 : vector<1x16x16x32xf32> to vector<16x16x32xf32>
    %c1_9 = arith.constant 1 : index
    %c0_10 = arith.constant 0 : index
    %c0_11 = arith.constant 0 : index
    %9 = vector.load %arg2[%c1_9, %c0_10, %c0_11] : memref<9x1x32xf32, #tpu.memory_space<vmem>>, vector<1x1x32xf32>
    %10 = vector.shape_cast %9 : vector<1x1x32xf32> to vector<1x32xf32>
    %11 = vector.shape_cast %10 : vector<1x32xf32> to vector<1x1x32xf32>
    %12 = vector.broadcast %11 : vector<1x1x32xf32> to vector<16x16x32xf32>
    %13 = arith.mulf %8, %12 : vector<16x16x32xf32>
    %14 = arith.addf %6, %13 : vector<16x16x32xf32>
    %c0_12 = arith.constant 0 : index
    %c0_13 = arith.constant 0 : index
    %c2 = arith.constant 2 : index
    %c0_14 = arith.constant 0 : index
    %15 = vector.load %arg1[%c0_12, %c0_13, %c2, %c0_14] : memref<1x18x18x32xf32, #tpu.memory_space<vmem>>, vector<1x16x16x32xf32>
    %16 = vector.shape_cast %15 : vector<1x16x16x32xf32> to vector<16x16x32xf32>
    %c2_15 = arith.constant 2 : index
    %c0_16 = arith.constant 0 : index
    %c0_17 = arith.constant 0 : index
    %17 = vector.load %arg2[%c2_15, %c0_16, %c0_17] : memref<9x1x32xf32, #tpu.memory_space<vmem>>, vector<1x1x32xf32>
    %18 = vector.shape_cast %17 : vector<1x1x32xf32> to vector<1x32xf32>
    %19 = vector.shape_cast %18 : vector<1x32xf32> to vector<1x1x32xf32>
    %20 = vector.broadcast %19 : vector<1x1x32xf32> to vector<16x16x32xf32>
    %21 = arith.mulf %16, %20 : vector<16x16x32xf32>
    %22 = arith.addf %14, %21 : vector<16x16x32xf32>
    %c0_18 = arith.constant 0 : index
    %c1_19 = arith.constant 1 : index
    %c0_20 = arith.constant 0 : index
    %c0_21 = arith.constant 0 : index
    %23 = vector.load %arg1[%c0_18, %c1_19, %c0_20, %c0_21] : memref<1x18x18x32xf32, #tpu.memory_space<vmem>>, vector<1x16x16x32xf32>
    %24 = vector.shape_cast %23 : vector<1x16x16x32xf32> to vector<16x16x32xf32>
    %c3 = arith.constant 3 : index
    %c0_22 = arith.constant 0 : index
    %c0_23 = arith.constant 0 : index
    %25 = vector.load %arg2[%c3, %c0_22, %c0_23] : memref<9x1x32xf32, #tpu.memory_space<vmem>>, vector<1x1x32xf32>
    %26 = vector.shape_cast %25 : vector<1x1x32xf32> to vector<1x32xf32>
    %27 = vector.shape_cast %26 : vector<1x32xf32> to vector<1x1x32xf32>
    %28 = vector.broadcast %27 : vector<1x1x32xf32> to vector<16x16x32xf32>
    %29 = arith.mulf %24, %28 : vector<16x16x32xf32>
    %30 = arith.addf %22, %29 : vector<16x16x32xf32>
    %c0_24 = arith.constant 0 : index
    %c1_25 = arith.constant 1 : index
    %c1_26 = arith.constant 1 : index
    %c0_27 = arith.constant 0 : index
    %31 = vector.load %arg1[%c0_24, %c1_25, %c1_26, %c0_27] : memref<1x18x18x32xf32, #tpu.memory_space<vmem>>, vector<1x16x16x32xf32>
    %32 = vector.shape_cast %31 : vector<1x16x16x32xf32> to vector<16x16x32xf32>
    %c4 = arith.constant 4 : index
    %c0_28 = arith.constant 0 : index
    %c0_29 = arith.constant 0 : index
    %33 = vector.load %arg2[%c4, %c0_28, %c0_29] : memref<9x1x32xf32, #tpu.memory_space<vmem>>, vector<1x1x32xf32>
    %34 = vector.shape_cast %33 : vector<1x1x32xf32> to vector<1x32xf32>
    %35 = vector.shape_cast %34 : vector<1x32xf32> to vector<1x1x32xf32>
    %36 = vector.broadcast %35 : vector<1x1x32xf32> to vector<16x16x32xf32>
    %37 = arith.mulf %32, %36 : vector<16x16x32xf32>
    %38 = arith.addf %30, %37 : vector<16x16x32xf32>
    %c0_30 = arith.constant 0 : index
    %c1_31 = arith.constant 1 : index
    %c2_32 = arith.constant 2 : index
    %c0_33 = arith.constant 0 : index
    %39 = vector.load %arg1[%c0_30, %c1_31, %c2_32, %c0_33] : memref<1x18x18x32xf32, #tpu.memory_space<vmem>>, vector<1x16x16x32xf32>
    %40 = vector.shape_cast %39 : vector<1x16x16x32xf32> to vector<16x16x32xf32>
    %c5 = arith.constant 5 : index
    %c0_34 = arith.constant 0 : index
    %c0_35 = arith.constant 0 : index
    %41 = vector.load %arg2[%c5, %c0_34, %c0_35] : memref<9x1x32xf32, #tpu.memory_space<vmem>>, vector<1x1x32xf32>
    %42 = vector.shape_cast %41 : vector<1x1x32xf32> to vector<1x32xf32>
    %43 = vector.shape_cast %42 : vector<1x32xf32> to vector<1x1x32xf32>
    %44 = vector.broadcast %43 : vector<1x1x32xf32> to vector<16x16x32xf32>
    %45 = arith.mulf %40, %44 : vector<16x16x32xf32>
    %46 = arith.addf %38, %45 : vector<16x16x32xf32>
    %c0_36 = arith.constant 0 : index
    %c2_37 = arith.constant 2 : index
    %c0_38 = arith.constant 0 : index
    %c0_39 = arith.constant 0 : index
    %47 = vector.load %arg1[%c0_36, %c2_37, %c0_38, %c0_39] : memref<1x18x18x32xf32, #tpu.memory_space<vmem>>, vector<1x16x16x32xf32>
    %48 = vector.shape_cast %47 : vector<1x16x16x32xf32> to vector<16x16x32xf32>
    %c6 = arith.constant 6 : index
    %c0_40 = arith.constant 0 : index
    %c0_41 = arith.constant 0 : index
    %49 = vector.load %arg2[%c6, %c0_40, %c0_41] : memref<9x1x32xf32, #tpu.memory_space<vmem>>, vector<1x1x32xf32>
    %50 = vector.shape_cast %49 : vector<1x1x32xf32> to vector<1x32xf32>
    %51 = vector.shape_cast %50 : vector<1x32xf32> to vector<1x1x32xf32>
    %52 = vector.broadcast %51 : vector<1x1x32xf32> to vector<16x16x32xf32>
    %53 = arith.mulf %48, %52 : vector<16x16x32xf32>
    %54 = arith.addf %46, %53 : vector<16x16x32xf32>
    %c0_42 = arith.constant 0 : index
    %c2_43 = arith.constant 2 : index
    %c1_44 = arith.constant 1 : index
    %c0_45 = arith.constant 0 : index
    %55 = vector.load %arg1[%c0_42, %c2_43, %c1_44, %c0_45] : memref<1x18x18x32xf32, #tpu.memory_space<vmem>>, vector<1x16x16x32xf32>
    %56 = vector.shape_cast %55 : vector<1x16x16x32xf32> to vector<16x16x32xf32>
    %c7 = arith.constant 7 : index
    %c0_46 = arith.constant 0 : index
    %c0_47 = arith.constant 0 : index
    %57 = vector.load %arg2[%c7, %c0_46, %c0_47] : memref<9x1x32xf32, #tpu.memory_space<vmem>>, vector<1x1x32xf32>
    %58 = vector.shape_cast %57 : vector<1x1x32xf32> to vector<1x32xf32>
    %59 = vector.shape_cast %58 : vector<1x32xf32> to vector<1x1x32xf32>
    %60 = vector.broadcast %59 : vector<1x1x32xf32> to vector<16x16x32xf32>
    %61 = arith.mulf %56, %60 : vector<16x16x32xf32>
    %62 = arith.addf %54, %61 : vector<16x16x32xf32>
    %c0_48 = arith.constant 0 : index
    %c2_49 = arith.constant 2 : index
    %c2_50 = arith.constant 2 : index
    %c0_51 = arith.constant 0 : index
    %63 = vector.load %arg1[%c0_48, %c2_49, %c2_50, %c0_51] : memref<1x18x18x32xf32, #tpu.memory_space<vmem>>, vector<1x16x16x32xf32>
    %64 = vector.shape_cast %63 : vector<1x16x16x32xf32> to vector<16x16x32xf32>
    %c8 = arith.constant 8 : index
    %c0_52 = arith.constant 0 : index
    %c0_53 = arith.constant 0 : index
    %65 = vector.load %arg2[%c8, %c0_52, %c0_53] : memref<9x1x32xf32, #tpu.memory_space<vmem>>, vector<1x1x32xf32>
    %66 = vector.shape_cast %65 : vector<1x1x32xf32> to vector<1x32xf32>
    %67 = vector.shape_cast %66 : vector<1x32xf32> to vector<1x1x32xf32>
    %68 = vector.broadcast %67 : vector<1x1x32xf32> to vector<16x16x32xf32>
    %69 = arith.mulf %64, %68 : vector<16x16x32xf32>
    %70 = arith.addf %62, %69 : vector<16x16x32xf32>
    %c0_54 = arith.constant 0 : index
    %c0_55 = arith.constant 0 : index
    %71 = vector.load %arg3[%c0_54, %c0_55] : memref<1x32xf32, #tpu.memory_space<vmem>>, vector<1x32xf32>
    %72 = vector.shape_cast %71 : vector<1x32xf32> to vector<1x1x32xf32>
    %73 = vector.broadcast %72 : vector<1x1x32xf32> to vector<16x16x32xf32>
    %74 = arith.addf %70, %73 : vector<16x16x32xf32>
    %75 = arith.negf %74 : vector<16x16x32xf32>
    %76 = math.exp %75 : vector<16x16x32xf32>
    %cst = arith.constant 1.000000e+00 : f32
    %77 = vector.broadcast %cst : f32 to vector<16x16x32xf32>
    %78 = arith.addf %77, %76 : vector<16x16x32xf32>
    %79 = arith.divf %77, %78 : vector<16x16x32xf32>
    %80 = arith.mulf %74, %79 : vector<16x16x32xf32>
    %81 = vector.shape_cast %80 : vector<16x16x32xf32> to vector<256x32xf32>
    %cst_56 = arith.constant dense<0.000000e+00> : vector<32xf32>
    %82 = vector.multi_reduction <add>, %81, %cst_56 [0] : vector<256x32xf32> to vector<32xf32>
    %83 = vector.shape_cast %82 : vector<32xf32> to vector<1x32xf32>
    %cst_57 = arith.constant 2.560000e+02 : f32
    %84 = vector.broadcast %cst_57 : f32 to vector<1x32xf32>
    %85 = arith.divf %83, %84 : vector<1x32xf32>
    %c0_58 = arith.constant 0 : index
    %c0_59 = arith.constant 0 : index
    %86 = vector.load %arg4[%c0_58, %c0_59] : memref<8x32xf32, #tpu.memory_space<vmem>>, vector<8x32xf32>
    %87 = vector.broadcast %85 : vector<1x32xf32> to vector<8x32xf32>
    %88 = arith.mulf %86, %87 : vector<8x32xf32>
    %cst_60 = arith.constant dense<0.000000e+00> : vector<8xf32>
    %89 = vector.multi_reduction <add>, %88, %cst_60 [1] : vector<8x32xf32> to vector<8xf32>
    %90 = vector.shape_cast %89 : vector<8xf32> to vector<8x1xf32>
    %c0_61 = arith.constant 0 : index
    %c0_62 = arith.constant 0 : index
    %91 = vector.load %arg5[%c0_61, %c0_62] : memref<8x1xf32, #tpu.memory_space<vmem>>, vector<8x1xf32>
    %92 = arith.addf %90, %91 : vector<8x1xf32>
    %93 = arith.negf %92 : vector<8x1xf32>
    %94 = math.exp %93 : vector<8x1xf32>
    %cst_63 = arith.constant 1.000000e+00 : f32
    %95 = vector.broadcast %cst_63 : f32 to vector<8x1xf32>
    %96 = arith.addf %95, %94 : vector<8x1xf32>
    %97 = arith.divf %95, %96 : vector<8x1xf32>
    %98 = arith.mulf %92, %97 : vector<8x1xf32>
    %c0_64 = arith.constant 0 : index
    %c0_65 = arith.constant 0 : index
    %99 = vector.load %arg6[%c0_64, %c0_65] : memref<8x32xf32, #tpu.memory_space<vmem>>, vector<8x32xf32>
    %100 = vector.broadcast %98 : vector<8x1xf32> to vector<8x32xf32>
    %101 = arith.mulf %99, %100 : vector<8x32xf32>
    %cst_66 = arith.constant dense<0.000000e+00> : vector<32xf32>
    %102 = vector.multi_reduction <add>, %101, %cst_66 [0] : vector<8x32xf32> to vector<32xf32>
    %103 = vector.shape_cast %102 : vector<32xf32> to vector<1x32xf32>
    %c0_67 = arith.constant 0 : index
    %c0_68 = arith.constant 0 : index
    %104 = vector.load %arg7[%c0_67, %c0_68] : memref<1x32xf32, #tpu.memory_space<vmem>>, vector<1x32xf32>
    %105 = arith.addf %103, %104 : vector<1x32xf32>
    %106 = arith.negf %105 : vector<1x32xf32>
    %107 = math.exp %106 : vector<1x32xf32>
    %cst_69 = arith.constant 1.000000e+00 : f32
    %108 = vector.broadcast %cst_69 : f32 to vector<1x32xf32>
    %109 = arith.addf %108, %107 : vector<1x32xf32>
    %110 = arith.divf %108, %109 : vector<1x32xf32>
    %111 = vector.broadcast %110 : vector<1x32xf32> to vector<256x32xf32>
    %112 = arith.mulf %81, %111 : vector<256x32xf32>
    %c0_70 = arith.constant 0 : index
    %c0_71 = arith.constant 0 : index
    %113 = vector.load %arg8[%c0_70, %c0_71] : memref<32x32xf32, #tpu.memory_space<vmem>>, vector<32x32xf32>
    %cst_72 = arith.constant dense<0.000000e+00> : vector<256x32xf32>
    %114 = tpu.matmul %112, %113, %cst_72 {dimension_numbers = #tpu.dot_dimension_numbers<[1], [0], [0], [1], [0, 0, 1, 1], [], []>} : vector<256x32xf32>, vector<32x32xf32>, vector<256x32xf32> -> vector<256x32xf32>
    %c0_73 = arith.constant 0 : index
    %c0_74 = arith.constant 0 : index
    %115 = vector.load %arg9[%c0_73, %c0_74] : memref<1x32xf32, #tpu.memory_space<vmem>>, vector<1x32xf32>
    %116 = vector.broadcast %115 : vector<1x32xf32> to vector<256x32xf32>
    %117 = arith.addf %114, %116 : vector<256x32xf32>
    %c0_75 = arith.constant 0 : index
    %c1_76 = arith.constant 1 : index
    %c1_77 = arith.constant 1 : index
    %c0_78 = arith.constant 0 : index
    %118 = vector.load %arg1[%c0_75, %c1_76, %c1_77, %c0_78] : memref<1x18x18x32xf32, #tpu.memory_space<vmem>>, vector<1x16x16x32xf32>
    %119 = vector.shape_cast %118 : vector<1x16x16x32xf32> to vector<16x16x32xf32>
    %120 = vector.shape_cast %119 : vector<16x16x32xf32> to vector<256x32xf32>
    %121 = arith.addf %117, %120 : vector<256x32xf32>
    %122 = tpu.transpose %121, [1, 0] : vector<256x32xf32> -> vector<32x256xf32>
    %c0_79 = arith.constant 0 : index
    %c0_80 = arith.constant 0 : index
    %c0_81 = arith.constant 0 : index
    %123 = vector.load %arg10[%c0_79, %c0_80, %c0_81] : memref<1x32x256xf32, #tpu.memory_space<vmem>>, vector<1x32x256xf32>
    %124 = vector.shape_cast %123 : vector<1x32x256xf32> to vector<32x256xf32>
    %125 = vector.shape_cast %122 : vector<32x256xf32> to vector<1x32x256xf32>
    tpu.vector_store %arg10[%c0_79, %c0_80, %c0_81], %125 {strides = array<i32>} : memref<1x32x256xf32, #tpu.memory_space<vmem>>, vector<1x32x256xf32>,
    return
  }
  func.func @transform_0(%arg0: i32) -> (i32, i32, i32, i32) {
    %c0_i32 = arith.constant 0 : i32
    %c0_i32_0 = arith.constant 0 : i32
    %c0_i32_1 = arith.constant 0 : i32
    %c0_i32_2 = arith.constant 0 : i32
    return %arg0, %c0_i32, %c0_i32_0, %c0_i32_1 : i32, i32, i32, i32
  }
  func.func @transform_1(%arg0: i32) -> (i32, i32, i32) {
    %c0_i32 = arith.constant 0 : i32
    %c0_i32_0 = arith.constant 0 : i32
    %c0_i32_1 = arith.constant 0 : i32
    %c0_i32_2 = arith.constant 0 : i32
    return %c0_i32, %c0_i32_0, %c0_i32_1 : i32, i32, i32
  }
  func.func @transform_2(%arg0: i32) -> (i32, i32) {
    %c0_i32 = arith.constant 0 : i32
    %c0_i32_0 = arith.constant 0 : i32
    %c0_i32_1 = arith.constant 0 : i32
    return %c0_i32, %c0_i32_0 : i32, i32
  }
  func.func @transform_3(%arg0: i32) -> (i32, i32) {
    %c0_i32 = arith.constant 0 : i32
    %c0_i32_0 = arith.constant 0 : i32
    %c0_i32_1 = arith.constant 0 : i32
    return %c0_i32, %c0_i32_0 : i32, i32
  }
  func.func @transform_4(%arg0: i32) -> (i32, i32) {
    %c0_i32 = arith.constant 0 : i32
    %c0_i32_0 = arith.constant 0 : i32
    %c0_i32_1 = arith.constant 0 : i32
    return %c0_i32, %c0_i32_0 : i32, i32
  }
  func.func @transform_5(%arg0: i32) -> (i32, i32) {
    %c0_i32 = arith.constant 0 : i32
    %c0_i32_0 = arith.constant 0 : i32
    %c0_i32_1 = arith.constant 0 : i32
    return %c0_i32, %c0_i32_0 : i32, i32
  }
  func.func @transform_6(%arg0: i32) -> (i32, i32) {
    %c0_i32 = arith.constant 0 : i32
    %c0_i32_0 = arith.constant 0 : i32
    %c0_i32_1 = arith.constant 0 : i32
    return %c0_i32, %c0_i32_0 : i32, i32
  }
  func.func @transform_7(%arg0: i32) -> (i32, i32) {
    %c0_i32 = arith.constant 0 : i32
    %c0_i32_0 = arith.constant 0 : i32
    %c0_i32_1 = arith.constant 0 : i32
    return %c0_i32, %c0_i32_0 : i32, i32
  }
  func.func @transform_8(%arg0: i32) -> (i32, i32) {
    %c0_i32 = arith.constant 0 : i32
    %c0_i32_0 = arith.constant 0 : i32
    %c0_i32_1 = arith.constant 0 : i32
    return %c0_i32, %c0_i32_0 : i32, i32
  }
  func.func @transform_9(%arg0: i32) -> (i32, i32, i32) {
    %c0_i32 = arith.constant 0 : i32
    %c0_i32_0 = arith.constant 0 : i32
    %c0_i32_1 = arith.constant 0 : i32
    return %arg0, %c0_i32, %c0_i32_0 : i32, i32, i32
  }
}

</mosaic_0001>

<bundles_post_ra>
// kernel: mbconv_block_forward.1
= control target key start
LH: loop header
LB: loop body
LE: loop exit
PB: predicated region body
PF: predicated region fallthrough
CT: control target
= control target key end

     0   :  { %s2766_s30 = smov 0   ;;  %s4773_s0 = inlined_call_operand.vmem [shape: f32[2,18,18,32], index: 0, kind: input, shape index: {}]   ;;  %s4774_s1 = inlined_call_operand.vmem [shape: f32[9,1,32], index: 1, kind: input, shape index: {}]   ;;  %s4775_s2 = inlined_call_operand.vmem [shape: f32[1,32], index: 2, kind: input, shape index: {}]   ;;  %s4776_s3 = inlined_call_operand.vmem [shape: f32[8,32], index: 3, kind: input, shape index: {}]   ;;  %s4777_s4 = inlined_call_operand.vmem [shape: f32[8,1], index: 4, kind: input, shape index: {}]   ;;  %s4778_s5 = inlined_call_operand.vmem [shape: f32[8,32], index: 5, kind: input, shape index: {}]   ;;  %s4779_s6 = inlined_call_operand.vmem [shape: f32[1,32], index: 6, kind: input, shape index: {}]   ;;  %s4780_s7 = inlined_call_operand.vmem [shape: f32[32,32], index: 7, kind: input, shape index: {}]   ;;  %s4781_s8 = inlined_call_operand.vmem [shape: f32[1,32], index: 8, kind: input, shape index: {}]   ;;  %s4782_s9 = inlined_call_operand.vmem [shape: f32[2,32,256], index: 9, kind: output, shape index: {}]  }
   0x1 LB: > { %s2136_s10 = sadd.s32 4294967295, %s2713_s30   ;;  %p2140_p0 = scmp.ge.s32.totalorder %s2713_s30, 1  ;;  %s2713_s30 = sphi %s2766_s30, %s19_s30  }
   0x2   : > { %p287_p1 = scmp.lt.s32.totalorder %s2713_s30, 3 }
   0x4   : > { %p288_p2 = pnand %p2140_p0, %p287_p1 }
   0x6   : > { %291 = sbr.rel (%p288_p2) target bundleno = 991 (0x3df), region = 56 }
   0xd   : > { %p323_p3 = scmp.lt.s32.totalorder %s2136_s10, 1  ;;  %v2785_v0 = vld [vmem:[%s4774_s1] ss:$0 sm:$0xff]  ;;  %v2790_v1 = vld [vmem:[%s4774_s1 + $0x3] ss:$0 sm:$0xff]  ;;  %vm1501_vm0 = vcmask 261120  }
   0xe   : > { %4874 = vst [vmem:[#allocation2_spill] sm:$0xff] %v2790_v1  ;;  %v2906_v44 = vld [vmem:[%s4774_s1 + $0x1] ss:$0 sm:$0xff] }
   0xf   : > { %s5205_s10 = smov (!%p323_p3, %s2136_s10), 1 }
  0x10   : > { %s2528_s11 = smul.u32 432, %s5205_s10  ;;  %s2423_s17 = sshll.u32 %s5205_s10, 6 }
  0x11   : > { %s332_s20 = scalar_lea.vmem %s4782_s9, %s2423_s17 }
  0x12   : > { %s2780_s14 = scalar_lea.vmem %s4773_s0, %s2528_s11 }
  0x13   : > { %v333_v2 = vld [vmem:[%s2780_s14] sm:$0xff]  ;;  %v334_v3 = vld [vmem:[%s2780_s14 + $0x8] sm:$0xff]  ;;  %v335_v4 = vld [vmem:[%s2780_s14 + $0x18] sm:$0xff] }
  0x14   : > { %v336_v5 = vld [vmem:[%s2780_s14 + $0x20] sm:$0xff]  ;;  %v337_v6 = vld [vmem:[%s2780_s14 + $0x30] sm:$0xff]  ;;  %v338_v7 = vld [vmem:[%s2780_s14 + $0x38] sm:$0xff]  ;;  %v2809_v14 = vmul.f32 %v2785_v0, %v333_v2  ;;  %v2812_v15 = vmul.f32 %v2785_v0, %v334_v3  ;;  %v2815_v16 = vmul.f32 %v2785_v0, %v335_v4  ;;  %v2836_v23 = vmul.f32 %v2790_v1, %v335_v4 }
  0x15   : > { %v339_v8 = vld [vmem:[%s2780_s14 + $0x48] sm:$0xff]  ;;  %v340_v9 = vld [vmem:[%s2780_s14 + $0x50] sm:$0xff]  ;;  %v341_v10 = vld [vmem:[%s2780_s14 + $0x60] sm:$0xff]  ;;  %v2827_v20 = vmul.f32 %v2785_v0, %v336_v5  ;;  %v2830_v21 = vmul.f32 %v2785_v0, %v337_v6  ;;  %v2833_v22 = vmul.f32 %v2785_v0, %v338_v7  ;;  %v2857_v30 = vmul.f32 %v2790_v1, %v336_v5 }
  0x16   : > { %v342_v11 = vld [vmem:[%s2780_s14 + $0x68] sm:$0xff]  ;;  %v2803_v12 = vld [vmem:[%s2780_s14 + $0x78] sm:$0xff]  ;;  %v2806_v13 = vld [vmem:[%s2780_s14 + $0x80] sm:$0xff]  ;;  %4876 = vst [vmem:[#allocation4_spill] sm:$0xff] %v2836_v23  ;;  %v2848_v27 = vmul.f32 %v2785_v0, %v339_v8  ;;  %v2851_v28 = vmul.f32 %v2785_v0, %v340_v9  ;;  %v2854_v29 = vmul.f32 %v2785_v0, %v341_v10  ;;  %v2880_v37 = vmul.f32 %v2790_v1, %v337_v6 }
  0x17   : > { %v2818_v17 = vld [vmem:[%s2780_s14 + $0x90] sm:$0xff]  ;;  %v2821_v18 = vld [vmem:[%s2780_s14 + $0x98] sm:$0xff]  ;;  %v2824_v19 = vld [vmem:[%s2780_s14 + $0xa8] sm:$0xff]  ;;  %4880 = vst [vmem:[#allocation8_spill] sm:$0xff] %v2857_v30  ;;  %v2869_v34 = vmul.f32 %v2785_v0, %v342_v11  ;;  %v2873_v35 = vmul.f32 %v2785_v0, %v2803_v12  ;;  %v2877_v36 = vmul.f32 %v2785_v0, %v2806_v13  ;;  %v2909_v45 = vmul.f32 %v2790_v1, %v338_v7 }
  0x18   : > { %4875 = vst [vmem:[#allocation3_spill] sm:$0xff] %v2824_v19  ;;  %v2839_v24 = vld [vmem:[%s2780_s14 + $0xb0] sm:$0xff]  ;;  %v2842_v25 = vld [vmem:[%s2780_s14 + $0xc0] sm:$0xff]  ;;  %v2845_v26 = vld [vmem:[%s2780_s14 + $0xc8] sm:$0xff]  ;;  %v2893_v41 = vmul.f32 %v2785_v0, %v2818_v17  ;;  %v2897_v42 = vmul.f32 %v2785_v0, %v2821_v18  ;;  %v2901_v43 = vmul.f32 %v2785_v0, %v2824_v19  ;;  %v2933_v52 = vmul.f32 %v2790_v1, %v339_v8 }
  0x19   : > { %4877 = vst [vmem:[#allocation5_spill] sm:$0xff] %v2839_v24  ;;  %4878 = vst [vmem:[#allocation6_spill] sm:$0xff] %v2842_v25  ;;  %v2860_v31 = vld [vmem:[%s2780_s14 + $0xd8] sm:$0xff]  ;;  %v2863_v32 = vld [vmem:[%s2780_s14 + $0xe0] sm:$0xff]  ;;  %v2922_v49 = vmul.f32 %v2785_v0, %v2839_v24  ;;  %v2926_v50 = vmul.f32 %v2785_v0, %v2842_v25  ;;  %v2930_v51 = vmul.f32 %v2785_v0, %v2845_v26 }
  0x1a   : > { %4879 = vst [vmem:[#allocation7_spill] sm:$0xff] %v2845_v26  ;;  %4881 = vst [vmem:[#allocation9_spill] sm:$0xff] %v2860_v31  ;;  %v2866_v33 = vld [vmem:[%s2780_s14 + $0xf0] sm:$0xff]  ;;  %v2883_v38 = vld [vmem:[%s2780_s14 + $0xf8] sm:$0xff]  ;;  %v2943_v55 = vmul.f32 %v2785_v0, %v2860_v31  ;;  %v2947_v56 = vmul.f32 %v2785_v0, %v2863_v32  ;;  %v2955_v59 = vmul.f32 %v2790_v1, %v340_v9 }
  0x1b   : > { %4882 = vst [vmem:[#allocation10_spill] sm:$0xff] %v2863_v32  ;;  %4883 = vst [vmem:[#allocation11_spill] sm:$0xff] %v2866_v33  ;;  %v2886_v39 = vld [vmem:[%s2780_s14 + $0x108] sm:$0xff]  ;;  %v2889_v40 = vld [vmem:[%s2780_s14 + $0x110] sm:$0xff]  ;;  %v2951_v57 = vmul.f32 %v2785_v0, %v2866_v33  ;;  %v2965_v62 = vmul.f32 %v2785_v0, %v2883_v38  ;;  %v2977_v4 = vmul.f32 %v2790_v1, %v341_v10 }
  0x1c   : > { %4884 = vst [vmem:[#allocation12_spill] sm:$0xff] %v2880_v37  ;;  %4885 = vst [vmem:[#allocation13_spill] sm:$0xff] %v2883_v38  ;;  %v2912_v46 = vld [vmem:[%s2780_s14 + $0x120] sm:$0xff]  ;;  %v2915_v47 = vld [vmem:[%s2780_s14 + $0x128] sm:$0xff]  ;;  %v2969_v63 = vmul.f32 %v2785_v0, %v2886_v39  ;;  %v2973_v2 = vmul.f32 %v2785_v0, %v2889_v40 }
  0x1d   : > { %4886 = vst [vmem:[#allocation14_spill] sm:$0xff] %v2886_v39  ;;  %4887 = vst [vmem:[#allocation15_spill] sm:$0xff] %v2889_v40  ;;  %v2918_v48 = vld [vmem:[%s2780_s14 + $0x138] sm:$0xff]  ;;  %v2936_v53 = vld [vmem:[%s2780_s14 + $0x140] sm:$0xff]  ;;  %v2984_v6 = vmul.f32 %v2785_v0, %v2912_v46  ;;  %v2988_v7 = vmul.f32 %v2785_v0, %v2915_v47 }
  0x1e   : > { %4888 = vst [vmem:[#allocation16_spill] sm:$0xff] %v2909_v45  ;;  %4889 = vst [vmem:[#allocation17_spill] sm:$0xff] %v2912_v46  ;;  %v2939_v54 = vld [vmem:[%s2780_s14 + $0x150] sm:$0xff]  ;;  %v404_v58 = vld [vmem:[%s2780_s14 + $0x1] sm:$0xff]  ;;  %v2992_v8 = vmul.f32 %v2785_v0, %v2918_v48 }
  0x1f   : > { %4890 = vst [vmem:[#allocation18_spill] sm:$0xff] %v2915_v47  ;;  %4891 = vst [vmem:[#allocation19_spill] sm:$0xff] %v2918_v48  ;;  %v2958_v60 = vld [vmem:[%s2780_s14 + $0x158] sm:$0xff]  ;;  %v2961_v61 = vld [vmem:[%s2780_s14 + $0x168] sm:$0xff] }
  0x20   : > { %4892 = vst [vmem:[#allocation20_spill] sm:$0xff] %v2933_v52  ;;  %4893 = vst [vmem:[#allocation21_spill] sm:$0xff] %v2936_v53  ;;  %v405_v3 = vld [vmem:[%s2780_s14 + $0x9] sm:$0xff]  ;;  %v2995_v9 = vld [vmem:[%s2780_s14 + $0x19] sm:$0xff]  ;;  %v3009_v52 = vmul.f32 %v2785_v0, %v2939_v54  ;;  %v3027_v23 = vmul.f32 %v2785_v0, %v2958_v60 }
  0x21   : > { %4894 = vst [vmem:[#allocation22_spill] sm:$0xff] %v2939_v54  ;;  %4895 = vst [vmem:[#allocation23_spill] sm:$0xff] %v2955_v59  ;;  %v2980_v5 = vld [vmem:[%s2780_s14 + $0x170] sm:$0xff]  ;;  %v2998_v10 = vld [vmem:[%s2780_s14 + $0x21] sm:$0xff]  ;;  %v3005_v59 = vmul.f32 %v2785_v0, %v2936_v53  ;;  %v3031_v54 = vmul.f32 %v2785_v0, %v2961_v61  ;;  %v445_v47 = vmul.f32 %v2906_v44, %v405_v3 }
  0x22   : > { %4896 = vst [vmem:[#allocation24_spill] sm:$0xff] %v2958_v60  ;;  %4897 = vst [vmem:[#allocation25_spill] sm:$0xff] %v2961_v61  ;;  %v3012_v45 = vld [vmem:[%s2780_s14 + $0x31] sm:$0xff]  ;;  %v3015_v37 = vld [vmem:[%s2780_s14 + $0x39] sm:$0xff]  ;;  %v446_v3 = vmul.f32 %v2906_v44, %v2995_v9  ;;  %v447_v40 = vmul.f32 %v2906_v44, %v2998_v10 }
  0x23   : > { %4898 = vst [vmem:[#allocation26_spill] sm:$0xff] %v2977_v4  ;;  %4899 = vst [vmem:[#allocation27_spill] sm:$0xff] %v2980_v5  ;;  %v3001_v4 = vmul.f32 %v2790_v1, %v342_v11  ;;  %v3018_v30 = vld [vmem:[%s2780_s14 + $0x49] sm:$0xff]  ;;  %v444_v11 = vmul.f32 %v2906_v44, %v404_v58  ;;  %v3034_v53 = vld [vmem:[%s2780_s14 + $0x51] sm:$0xff]  ;;  %v448_v39 = vmul.f32 %v2906_v44, %v3012_v45 }
  0x24   : > { %4900 = vst [vmem:[#allocation28_spill] sm:$0xff] %v2995_v9  ;;  %4901 = vst [vmem:[#allocation29_spill] sm:$0xff] %v2998_v10  ;;  %v3037_v48 = vld [vmem:[%s2780_s14 + $0x61] sm:$0xff]  ;;  %v3040_v58 = vld [vmem:[%s2780_s14 + $0x69] sm:$0xff]  ;;  %v449_v9 = vmul.f32 %v2906_v44, %v3015_v37  ;;  %v450_v10 = vmul.f32 %v2906_v44, %v3018_v30 }
  0x25   : > { %4902 = vst [vmem:[#allocation30_spill] sm:$0xff] %v3001_v4  ;;  %4903 = vst [vmem:[#allocation31_spill] sm:$0xff] %v3012_v45  ;;  %v3023_v4 = vmul.f32 %v2790_v1, %v2803_v12  ;;  %v3045_v12 = vmul.f32 %v2790_v1, %v2806_v13  ;;  %v3052_v61 = vld [vmem:[%s2780_s14 + $0x79] sm:$0xff]  ;;  %v3055_v60 = vld [vmem:[%s2780_s14 + $0x81] sm:$0xff]  ;;  %v3066_v13 = vmul.f32 %v2790_v1, %v2818_v17 }
  0x26   : > { %4904 = vst [vmem:[#allocation32_spill] sm:$0xff] %v3015_v37  ;;  %4905 = vst [vmem:[#allocation33_spill] sm:$0xff] %v3018_v30  ;;  %v3058_v46 = vld [vmem:[%s2780_s14 + $0x91] sm:$0xff]  ;;  %v3085_v17 = vmul.f32 %v2790_v1, %v2821_v18  ;;  %v3091_v38 = vld [vmem:[%s2780_s14 + $0xc9] sm:$0xff]  ;;  %v451_v45 = vmul.f32 %v2906_v44, %v3034_v53  ;;  %v452_v37 = vmul.f32 %v2906_v44, %v3037_v48 }
  0x27   : > { %4906 = vst [vmem:[#allocation34_spill] sm:$0xff] %v3023_v4  ;;  %4907 = vst [vmem:[#allocation35_spill] sm:$0xff] %v3034_v53  ;;  %v3049_v4 = vmul.f32 %v2785_v0, %v2980_v5  ;;  %v3069_v0 = vld [vmem:[%s2780_s14 + $0x99] sm:$0xff]  ;;  %v3075_v5 = vld [vmem:[%s2780_s14 + $0xb1] sm:$0xff]  ;;  %v453_v30 = vmul.f32 %v2906_v44, %v3040_v58  ;;  %v3103_v18 = vadd.f32 %v444_v11, %v2809_v14 }
  0x28   : > { %4908 = vst [vmem:[#allocation36_spill] sm:$0xff] %v3037_v48  ;;  %4909 = vst [vmem:[#allocation37_spill] sm:$0xff] %v3040_v58  ;;  %v3094_v33 = vld [vmem:[%s2780_s14 + $0xd9] sm:$0xff]  ;;  %v3109_v32 = vld [vmem:[%s2780_s14 + $0xf1] sm:$0xff]  ;;  %v454_v53 = vmul.f32 %v2906_v44, %v3052_v61  ;;  %v455_v48 = vmul.f32 %v2906_v44, %v3055_v60  ;;  %v456_v58 = vmul.f32 %v2906_v44, %v3058_v46 }
  0x29   : > { %4910 = vst [vmem:[#allocation38_spill] sm:$0xff] %v3045_v12  ;;  %4911 = vst [vmem:[#allocation39_spill] sm:$0xff] %v3052_v61  ;;  %v3072_v12 = vld [vmem:[%s2780_s14 + $0xa9] sm:$0xff]  ;;  %v3112_v31 = vld [vmem:[%s2780_s14 + $0xf9] sm:$0xff]  ;;  %v3121_v14 = vadd.f32 %v445_v47, %v2812_v15  ;;  %v457_v61 = vmul.f32 %v2906_v44, %v3069_v0  ;;  %v3139_v15 = vadd.f32 %v446_v3, %v2815_v16 }
  0x2a   : > { %4912 = vst [vmem:[#allocation40_spill] sm:$0xff] %v3055_v60  ;;  %4913 = vst [vmem:[#allocation41_spill] sm:$0xff] %v3058_v46  ;;  %v3124_v11 = vld [vmem:[%s2780_s14 + $0x109] sm:$0xff]  ;;  %v3127_v26 = vld [vmem:[%s2780_s14 + $0x111] sm:$0xff]  ;;  %v458_v60 = vmul.f32 %v2906_v44, %v3072_v12  ;;  %v459_v46 = vmul.f32 %v2906_v44, %v3075_v5 }
  0x2b   : > { %4914 = vst [vmem:[#allocation42_spill] sm:$0xff] %v3066_v13  ;;  %4915 = vst [vmem:[#allocation43_spill] sm:$0xff] %v3069_v0  ;;  %v3088_v13 = vld [vmem:[%s2780_s14 + $0xc1] sm:$0xff]  ;;  %v3142_v47 = vld [vmem:[%s2780_s14 + $0x129] sm:$0xff]  ;;  %v461_v0 = vmul.f32 %v2906_v44, %v3091_v38 }
  0x2c   : > { %4916 = vst [vmem:[#allocation44_spill] sm:$0xff] %v3072_v12  ;;  %4917 = vst [vmem:[#allocation45_spill] sm:$0xff] %v3075_v5  ;;  %v3130_v25 = vld [vmem:[%s2780_s14 + $0x121] sm:$0xff]  ;;  %v3145_v24 = vld [vmem:[%s2780_s14 + $0x139] sm:$0xff]  ;;  %v460_v19 = vmul.f32 %v2906_v44, %v3088_v13  ;;  %v462_v12 = vmul.f32 %v2906_v44, %v3094_v33  ;;  %v3157_v5 = vadd.f32 %v447_v40, %v2827_v20 }
  0x2d   : > { %4918 = vst [vmem:[#allocation46_spill] sm:$0xff] %v3085_v17  ;;  %4919 = vst [vmem:[#allocation47_spill] sm:$0xff] %v3088_v13  ;;  %v3106_v17 = vld [vmem:[%s2780_s14 + $0xe1] sm:$0xff]  ;;  %v3160_v16 = vld [vmem:[%s2780_s14 + $0x151] sm:$0xff]  ;;  %v464_v13 = vmul.f32 %v2906_v44, %v3109_v32  ;;  %v466_v40 = vmul.f32 %v2906_v44, %v3124_v11 }
  0x2e   : > { %4920 = vst [vmem:[#allocation48_spill] sm:$0xff] %v3091_v38  ;;  %4921 = vst [vmem:[#allocation49_spill] sm:$0xff] %v3094_v33  ;;  %v3148_v1 = vld [vmem:[%s2780_s14 + $0x141] sm:$0xff]  ;;  %v3163_v3 = vld [vmem:[%s2780_s14 + $0x159] sm:$0xff]  ;;  %v465_v38 = vmul.f32 %v2906_v44, %v3112_v31  ;;  %v3175_v33 = vadd.f32 %v448_v39, %v2830_v21  ;;  %v470_v21 = vmul.f32 %v2906_v44, %v3145_v24 }
  0x2f   : > { %4922 = vst [vmem:[#allocation50_spill] sm:$0xff] %v3103_v18  ;;  %4923 = vst [vmem:[#allocation51_spill] sm:$0xff] %v3106_v17  ;;  %v3178_v20 = vld [vmem:[%s2780_s14 + $0x171] sm:$0xff]  ;;  %v3187_v18 = vadd.f32 %v449_v9, %v2833_v22  ;;  %v471_v39 = vmul.f32 %v2906_v44, %v3148_v1  ;;  %v473_v22 = vmul.f32 %v2906_v44, %v3163_v3 }
  0x30   : > { %4924 = vst [vmem:[#allocation52_spill] sm:$0xff] %v3109_v32  ;;  %4925 = vst [vmem:[#allocation53_spill] sm:$0xff] %v3112_v31  ;;  %v469_v31 = vmul.f32 %v2906_v44, %v3142_v47  ;;  %v3401_v32 = vld [vmem:[%s2780_s14 + $0x16a] sm:$0xff] }
  0x31   : > { %4926 = vst [vmem:[#allocation54_spill] sm:$0xff] %v3121_v14  ;;  %4927 = vst [vmem:[#allocation55_spill] sm:$0xff] %v3124_v11  ;;  %v463_v14 = vmul.f32 %v2906_v44, %v3106_v17  ;;  %v468_v17 = vmul.f32 %v2906_v44, %v3130_v25  ;;  %v3395_v11 = vld [vmem:[%s2780_s14 + $0x152] sm:$0xff] }
  0x32   : > { %4928 = vst [vmem:[#allocation56_spill] sm:$0xff] %v3127_v26  ;;  %4929 = vst [vmem:[#allocation57_spill] sm:$0xff] %v3130_v25  ;;  %v472_v25 = vmul.f32 %v2906_v44, %v3160_v16 }
  0x33   : > { %4930 = vst [vmem:[#allocation58_spill] sm:$0xff] %v3139_v15  ;;  %4931 = vst [vmem:[#allocation59_spill] sm:$0xff] %v3142_v47  ;;  %v3166_v15 = vld [vmem:[%s2780_s14 + $0x169] sm:$0xff]  ;;  %v3205_v47 = vadd.f32 %v451_v45, %v2851_v28  ;;  %v3222_v28 = vadd.f32 %v456_v58, %v2893_v41  ;;  %v3244_v41 = vadd.f32 %v460_v19, %v2926_v50 }
  0x34   : > { %4932 = vst [vmem:[#allocation60_spill] sm:$0xff] %v3145_v24  ;;  %4933 = vst [vmem:[#allocation61_spill] sm:$0xff] %v3148_v1  ;;  %v474_v9 = vmul.f32 %v2906_v44, %v3166_v15  ;;  %v475_v24 = vmul.f32 %v2906_v44, %v3178_v20  ;;  %v3210_v1 = vadd.f32 %v452_v37, %v2854_v29  ;;  %v508_v37 = vld [vmem:[%s2780_s14 + $0x2] sm:$0xff] }
  0x35   : > { %4934 = vst [vmem:[#allocation62_spill] sm:$0xff] %v3157_v5  ;;  %4935 = vst [vmem:[#allocation63_spill] sm:$0xff] %v3160_v16  ;;  %v467_v5 = vmul.f32 %v2906_v44, %v3127_v26  ;;  %v3196_v26 = vadd.f32 %v450_v10, %v2848_v27  ;;  %v3213_v27 = vadd.f32 %v453_v30, %v2869_v34  ;;  %v509_v30 = vld [vmem:[%s2780_s14 + $0xa] sm:$0xff]  ;;  %v3233_v34 = vld [vmem:[%s2780_s14 + $0x1a] sm:$0xff] }
  0x36   : > { %4936 = vst [vmem:[#allocation64_spill] sm:$0xff] %v3163_v3  ;;  %4937 = vst [vmem:[#allocation65_spill] sm:$0xff] %v3166_v15  ;;  %v3216_v10 = vadd.f32 %v454_v53, %v2873_v35  ;;  %v3219_v15 = vadd.f32 %v455_v48, %v2877_v36  ;;  %v3225_v44 = vadd.f32 %v457_v61, %v2897_v42  ;;  %v3238_v35 = vld [vmem:[%s4774_s1 + $0x2] ss:$0 sm:$0xff]  ;;  %v3256_v48 = vld [vmem:[%s2780_s14 + $0x32] sm:$0xff] }
  0x37   : > { %4938 = vst [vmem:[#allocation66_spill] sm:$0xff] %v3178_v20  ;;  %v3228_v29 = vadd.f32 %v458_v60, %v2901_v43  ;;  %4939 = vst [vmem:[#allocation67_spill] sm:$0xff] %v3233_v34  ;;  %v3241_v36 = vadd.f32 %v459_v46, %v2922_v49  ;;  %v3247_v42 = vadd.f32 %v461_v0, %v2930_v51  ;;  %v3253_v45 = vld [vmem:[%s2780_s14 + $0x22] sm:$0xff]  ;;  %v3259_v53 = vld [vmem:[%s2780_s14 + $0x3a] sm:$0xff] }
  0x38   : > { %v3250_v43 = vadd.f32 %v462_v12, %v2943_v55  ;;  %4940 = vst [vmem:[#allocation68_spill] sm:$0xff] %v3253_v45  ;;  %4941 = vst [vmem:[#allocation69_spill] sm:$0xff] %v3256_v48  ;;  %v3262_v46 = vld [vmem:[%s2780_s14 + $0x4a] sm:$0xff]  ;;  %v3265_v19 = vadd.f32 %v463_v14, %v2947_v56  ;;  %v3268_v49 = vadd.f32 %v464_v13, %v2951_v57  ;;  %v3277_v55 = vld [vmem:[%s2780_s14 + $0x52] sm:$0xff] }
  0x39   : > { %4942 = vst [vmem:[#allocation70_spill] sm:$0xff] %v3259_v53  ;;  %4943 = vst [vmem:[#allocation71_spill] sm:$0xff] %v3262_v46  ;;  %v3271_v50 = vadd.f32 %v465_v38, %v2965_v62  ;;  %v3274_v51 = vadd.f32 %v466_v40, %v2969_v63  ;;  %v3280_v60 = vld [vmem:[%s2780_s14 + $0x62] sm:$0xff]  ;;  %v3283_v61 = vld [vmem:[%s2780_s14 + $0x6a] sm:$0xff]  ;;  %v3286_v56 = vadd.f32 %v467_v5, %v2973_v2 }
  0x3a   : > { %4946 = vst [vmem:[#allocation74_spill] sm:$0xff] %v3277_v55  ;;  %4947 = vst [vmem:[#allocation75_spill] sm:$0xff] %v3280_v60  ;;  %v3289_v38 = vadd.f32 %v468_v17, %v2984_v6  ;;  %v3292_v57 = vadd.f32 %v469_v31, %v2988_v7  ;;  %v3295_v62 = vadd.f32 %v470_v21, %v2992_v8  ;;  %v3298_v63 = vld [vmem:[%s2780_s14 + $0x7a] sm:$0xff]  ;;  %v3301_v58 = vld [vmem:[%s2780_s14 + $0x82] sm:$0xff] }
  0x3b   : > { %4944 = vst [vmem:[#allocation72_spill] sm:$0xff] %v3271_v50  ;;  %4945 = vst [vmem:[#allocation73_spill] sm:$0xff] %v3274_v51  ;;  %v3304_v12 = vld [vmem:[%s2780_s14 + $0x92] sm:$0xff]  ;;  %v3307_v2 = vadd.f32 %v471_v39, %v3005_v59  ;;  %v3310_v5 = vadd.f32 %v472_v25, %v3009_v52  ;;  %v3313_v31 = vadd.f32 %v473_v22, %v3027_v23  ;;  %v3319_v7 = vld [vmem:[%s2780_s14 + $0x9a] sm:$0xff] }
  0x3c   : > { %4948 = vst [vmem:[#allocation76_spill] sm:$0xff] %v3283_v61  ;;  %4949 = vst [vmem:[#allocation77_spill] sm:$0xff] %v3286_v56  ;;  %v3316_v6 = vadd.f32 %v474_v9, %v3031_v54  ;;  %v3322_v8 = vld [vmem:[%s2780_s14 + $0xaa] sm:$0xff]  ;;  %v3325_v13 = vld [vmem:[%s2780_s14 + $0xb2] sm:$0xff]  ;;  %v3328_v59 = vadd.f32 %v475_v24, %v3049_v4  ;;  %v548_v54 = vmul.f32 %v3238_v35, %v508_v37 }
  0x3d   : > { %4950 = vst [vmem:[#allocation78_spill] sm:$0xff] %v3289_v38  ;;  %4951 = vst [vmem:[#allocation79_spill] sm:$0xff] %v3292_v57  ;;  %v3331_v25 = vld [vmem:[%s2780_s14 + $0xc2] sm:$0xff]  ;;  %v3334_v52 = vld [vmem:[%s2780_s14 + $0xca] sm:$0xff]  ;;  %v549_v0 = vmul.f32 %v3238_v35, %v509_v30  ;;  %v550_v17 = vmul.f32 %v3238_v35, %v3233_v34  ;;  %v551_v40 = vmul.f32 %v3238_v35, %v3253_v45 }
  0x3e   : > { %4952 = vst [vmem:[#allocation80_spill] sm:$0xff] %v3295_v62  ;;  %4953 = vst [vmem:[#allocation81_spill] sm:$0xff] %v3298_v63  ;;  %v3337_v23 = vld [vmem:[%s2780_s14 + $0xda] sm:$0xff]  ;;  %v3344_v14 = vld [vmem:[%s2780_s14 + $0xe2] sm:$0xff]  ;;  %v552_v21 = vmul.f32 %v3238_v35, %v3256_v48  ;;  %v553_v39 = vmul.f32 %v3238_v35, %v3259_v53  ;;  %v554_v22 = vmul.f32 %v3238_v35, %v3262_v46 }
  0x3f   : > { %4954 = vst [vmem:[#allocation82_spill] sm:$0xff] %v3301_v58  ;;  %4955 = vst [vmem:[#allocation83_spill] sm:$0xff] %v3304_v12  ;;  %v3347_v24 = vld [vmem:[%s2780_s14 + $0xf2] sm:$0xff]  ;;  %v3350_v4 = vld [vmem:[%s2780_s14 + $0xfa] sm:$0xff]  ;;  %v555_v45 = vmul.f32 %v3238_v35, %v3277_v55  ;;  %v556_v48 = vmul.f32 %v3238_v35, %v3280_v60  ;;  %v557_v53 = vmul.f32 %v3238_v35, %v3283_v61 }
  0x40   : > { %4956 = vst [vmem:[#allocation84_spill] sm:$0xff] %v3307_v2  ;;  %4957 = vst [vmem:[#allocation85_spill] sm:$0xff] %v3310_v5  ;;  %v3361_v9 = vld [vmem:[%s2780_s14 + $0x10a] sm:$0xff]  ;;  %v3364_v37 = vld [vmem:[%s2780_s14 + $0x112] sm:$0xff]  ;;  %v558_v46 = vmul.f32 %v3238_v35, %v3298_v63  ;;  %v559_v16 = vmul.f32 %v3238_v35, %v3301_v58  ;;  %v560_v55 = vmul.f32 %v3238_v35, %v3304_v12 }
  0x41   : > { %4958 = vst [vmem:[#allocation86_spill] sm:$0xff] %v3313_v31  ;;  %4959 = vst [vmem:[#allocation87_spill] sm:$0xff] %v3316_v6  ;;  %v3367_v30 = vld [vmem:[%s2780_s14 + $0x122] sm:$0xff]  ;;  %v3378_v34 = vld [vmem:[%s2780_s14 + $0x12a] sm:$0xff]  ;;  %v561_v60 = vmul.f32 %v3238_v35, %v3319_v7  ;;  %v562_v61 = vmul.f32 %v3238_v35, %v3322_v8  ;;  %v564_v58 = vmul.f32 %v3238_v35, %v3331_v25 }
  0x42   : > { %4960 = vst [vmem:[#allocation88_spill] sm:$0xff] %v3319_v7  ;;  %4961 = vst [vmem:[#allocation89_spill] sm:$0xff] %v3322_v8  ;;  %v3381_v20 = vld [vmem:[%s2780_s14 + $0x13a] sm:$0xff]  ;;  %v3384_v3 = vld [vmem:[%s2780_s14 + $0x142] sm:$0xff]  ;;  %v565_v12 = vmul.f32 %v3238_v35, %v3334_v52  ;;  %v566_v7 = vmul.f32 %v3238_v35, %v3337_v23  ;;  %v567_v8 = vmul.f32 %v3238_v35, %v3344_v14 }
  0x43   : > { %4962 = vst [vmem:[#allocation90_spill] sm:$0xff] %v3325_v13  ;;  %4963 = vst [vmem:[#allocation91_spill] sm:$0xff] %v3328_v59  ;;  %v3398_v63 = vld [vmem:[%s2780_s14 + $0x15a] sm:$0xff]  ;;  %v563_v59 = vmul.f32 %v3238_v35, %v3325_v13  ;;  %v3412_v6 = vld [vmem:[%s2780_s14 + $0x172] sm:$0xff]  ;;  %v568_v31 = vmul.f32 %v3238_v35, %v3347_v24  ;;  %v569_v13 = vmul.f32 %v3238_v35, %v3350_v4 }
  0x44   : > { %4964 = vst [vmem:[#allocation92_spill] sm:$0xff] %v3331_v25  ;;  %4965 = vst [vmem:[#allocation93_spill] sm:$0xff] %v3334_v52  ;;  %v570_v25 = vmul.f32 %v3238_v35, %v3361_v9  ;;  %v571_v52 = vmul.f32 %v3238_v35, %v3364_v37  ;;  %v573_v5 = vmul.f32 %v3238_v35, %v3378_v34  ;;  %v4980_v2 = vld [vmem:[#allocation50_spill] sm:$0xff] }
  0x45   : > { %4966 = vst [vmem:[#allocation94_spill] sm:$0xff] %v3337_v23  ;;  %4967 = vst [vmem:[#allocation95_spill] sm:$0xff] %v3344_v14  ;;  %v572_v23 = vmul.f32 %v3238_v35, %v3367_v30  ;;  %v574_v14 = vmul.f32 %v3238_v35, %v3381_v20  ;;  %v4981_v62 = vld [vmem:[#allocation54_spill] sm:$0xff]  ;;  %v584_v51 = vadd.f32 %v552_v21, %v3175_v33  ;;  %v5003_v21 = vld [vmem:[#allocation11_spill] sm:$0xff] }
  0x46   : > { %4968 = vst [vmem:[#allocation96_spill] sm:$0xff] %v3347_v24  ;;  %4969 = vst [vmem:[#allocation97_spill] sm:$0xff] %v3350_v4  ;;  %v575_v24 = vmul.f32 %v3238_v35, %v3384_v3  ;;  %v576_v4 = vmul.f32 %v3238_v35, %v3395_v11  ;;  %v581_v57 = vadd.f32 %v549_v0, %v4981_v62  ;;  %v4983_v56 = vld [vmem:[#allocation62_spill] sm:$0xff]  ;;  %v5000_v0 = vld [vmem:[#allocation7_spill] sm:$0xff] }
  0x47   : > { %4970 = vst [vmem:[#allocation98_spill] sm:$0xff] %v3361_v9  ;;  %4971 = vst [vmem:[#allocation99_spill] sm:$0xff] %v3364_v37  ;;  %v577_v9 = vmul.f32 %v3238_v35, %v3398_v63  ;;  %v578_v37 = vmul.f32 %v3238_v35, %v3401_v32  ;;  %v587_v50 = vadd.f32 %v555_v45, %v3205_v47 }
  0x48   : > { %4972 = vst [vmem:[#allocation100_spill] sm:$0xff] %v3367_v30  ;;  %4973 = vst [vmem:[#allocation101_spill] sm:$0xff] %v3378_v34  ;;  %v579_v30 = vmul.f32 %v3238_v35, %v3412_v6  ;;  %v580_v34 = vadd.f32 %v548_v54, %v4980_v2  ;;  %v589_v35 = vadd.f32 %v557_v53, %v3213_v27  ;;  %v3479_v54 = vld [vmem:[%s2780_s14 + $0x180] sm:$0xff] }
  0x49   : > { %4974 = vst [vmem:[#allocation102_spill] sm:$0xff] %v3381_v20  ;;  %4975 = vst [vmem:[#allocation103_spill] sm:$0xff] %v3384_v3  ;;  %v4982_v20 = vld [vmem:[#allocation58_spill] sm:$0xff]  ;;  %v583_v3 = vadd.f32 %v551_v40, %v4983_v56  ;;  %v590_v2 = vadd.f32 %v558_v46, %v3216_v10  ;;  %v591_v62 = vadd.f32 %v559_v16, %v3219_v15  ;;  %v4984_v15 = vld [vmem:[#allocation72_spill] sm:$0xff] }
  0x4a   : > { %4976 = vst [vmem:[#allocation104_spill] sm:$0xff] %v3395_v11  ;;  %4977 = vst [vmem:[#allocation105_spill] sm:$0xff] %v3398_v63  ;;  %v582_v38 = vadd.f32 %v550_v17, %v4982_v20  ;;  %v585_v11 = vadd.f32 %v553_v39, %v3187_v18  ;;  %v586_v63 = vadd.f32 %v554_v22, %v3196_v26  ;;  %v4989_v46 = vld [vmem:[#allocation80_spill] sm:$0xff]  ;;  %v3490_v22 = vld [vmem:[%s2780_s14 + $0x188] sm:$0xff] }
  0x4b   : > { %4978 = vst [vmem:[#allocation106_spill] sm:$0xff] %v3401_v32  ;;  %4979 = vst [vmem:[#allocation107_spill] sm:$0xff] %v3412_v6  ;;  %v588_v32 = vadd.f32 %v556_v48, %v3210_v1  ;;  %v592_v20 = vadd.f32 %v560_v55, %v3222_v28  ;;  %v593_v56 = vadd.f32 %v561_v60, %v3225_v44  ;;  %v4985_v28 = vld [vmem:[#allocation73_spill] sm:$0xff]  ;;  %v4990_v55 = vld [vmem:[#allocation84_spill] sm:$0xff] }
  0x4c   : > { %v594_v33 = vadd.f32 %v562_v61, %v3228_v29  ;;  %v595_v18 = vadd.f32 %v563_v59, %v3241_v36  ;;  %v596_v26 = vadd.f32 %v564_v58, %v3244_v41  ;;  %v597_v47 = vadd.f32 %v565_v12, %v3247_v42  ;;  %v4986_v44 = vld [vmem:[#allocation77_spill] sm:$0xff]  ;;  %v4987_v29 = vld [vmem:[#allocation78_spill] sm:$0xff]  ;;  %v4988_v36 = vld [vmem:[#allocation79_spill] sm:$0xff]  ;;  %4999 = vst [vmem:[#allocation50_spill] sm:$0xff] %v3479_v54 }
  0x4d   : > { %v598_v1 = vadd.f32 %v566_v7, %v3250_v43  ;;  %v599_v27 = vadd.f32 %v567_v8, %v3265_v19  ;;  %v600_v10 = vadd.f32 %v568_v31, %v3268_v49  ;;  %v601_v16 = vadd.f32 %v569_v13, %v4984_v15  ;;  %v4991_v60 = vld [vmem:[#allocation85_spill] sm:$0xff]  ;;  %v4992_v61 = vld [vmem:[#allocation86_spill] sm:$0xff]  ;;  %v4993_v49 = vld [vmem:[#allocation87_spill] sm:$0xff]  ;;  %5004 = vst [vmem:[#allocation54_spill] sm:$0xff] %v3490_v22 }
  0x4e   : > { %v602_v45 = vadd.f32 %v570_v25, %v4985_v28  ;;  %v603_v48 = vadd.f32 %v571_v52, %v4986_v44  ;;  %v604_v53 = vadd.f32 %v572_v23, %v4987_v29  ;;  %v605_v41 = vadd.f32 %v573_v5, %v4988_v36  ;;  %v4994_v31 = vld [vmem:[#allocation91_spill] sm:$0xff]  ;;  %v4996_v13 = vld [vmem:[#allocation2_spill] sm:$0xff]  ;;  %v4997_v25 = vld [vmem:[#allocation5_spill] sm:$0xff] }
  0x4f   : > { %v606_v42 = vadd.f32 %v574_v14, %v4989_v46  ;;  %v607_v43 = vadd.f32 %v575_v24, %v4990_v55  ;;  %v608_v19 = vadd.f32 %v576_v4, %v4991_v60  ;;  %v609_v58 = vadd.f32 %v577_v9, %v4992_v61  ;;  %v4995_v8 = vld [vmem:[#allocation3_spill] sm:$0xff]  ;;  %v4998_v23 = vld [vmem:[#allocation6_spill] sm:$0xff]  ;;  %v5001_v14 = vld [vmem:[#allocation9_spill] sm:$0xff] }
  0x50   : > { %v610_v12 = vadd.f32 %v578_v37, %v4993_v49  ;;  %v611_v7 = vadd.f32 %v579_v30, %v4994_v31  ;;  %v665_v59 = vmul.f32 %v4996_v13, %v4995_v8  ;;  %v666_v52 = vmul.f32 %v4996_v13, %v4997_v25  ;;  %v5002_v4 = vld [vmem:[#allocation10_spill] sm:$0xff]  ;;  %v5005_v9 = vld [vmem:[#allocation13_spill] sm:$0xff]  ;;  %v5007_v28 = vld [vmem:[#allocation15_spill] sm:$0xff] }
  0x51   : > { %v667_v5 = vmul.f32 %v4996_v13, %v4998_v23  ;;  %v668_v17 = vmul.f32 %v4996_v13, %v5000_v0  ;;  %v669_v24 = vmul.f32 %v4996_v13, %v5001_v14  ;;  %v670_v40 = vmul.f32 %v4996_v13, %v5002_v4  ;;  %v5006_v30 = vld [vmem:[#allocation14_spill] sm:$0xff]  ;;  %v5008_v29 = vld [vmem:[#allocation17_spill] sm:$0xff]  ;;  %v5010_v60 = vld [vmem:[#allocation19_spill] sm:$0xff] }
  0x52   : > { %v671_v39 = vmul.f32 %v4996_v13, %v5003_v21  ;;  %v672_v37 = vmul.f32 %v4996_v13, %v5005_v9  ;;  %v673_v15 = vmul.f32 %v4996_v13, %v5006_v30  ;;  %v674_v44 = vmul.f32 %v4996_v13, %v5007_v28  ;;  %v5009_v46 = vld [vmem:[#allocation18_spill] sm:$0xff]  ;;  %v5011_v49 = vld [vmem:[#allocation21_spill] sm:$0xff]  ;;  %v5013_v23 = vld [vmem:[#allocation24_spill] sm:$0xff] }
  0x53   : > { %v675_v36 = vmul.f32 %v4996_v13, %v5008_v29  ;;  %v676_v55 = vmul.f32 %v4996_v13, %v5009_v46  ;;  %v677_v61 = vmul.f32 %v4996_v13, %v5010_v60  ;;  %v678_v31 = vmul.f32 %v4996_v13, %v5011_v49  ;;  %v5012_v8 = vld [vmem:[#allocation22_spill] sm:$0xff]  ;;  %v5014_v14 = vld [vmem:[#allocation25_spill] sm:$0xff]  ;;  %v5015_v21 = vld [vmem:[#allocation27_spill] sm:$0xff] }
  0x54   : > { %v679_v25 = vmul.f32 %v4996_v13, %v5012_v8  ;;  %v680_v0 = vmul.f32 %v4996_v13, %v5013_v23  ;;  %v681_v4 = vmul.f32 %v4996_v13, %v5014_v14  ;;  %v682_v9 = vmul.f32 %v4996_v13, %v5015_v21  ;;  %v5016_v29 = vld [vmem:[#allocation4_spill] sm:$0xff] }
  0x55   : > { %v683_v30 = vmul.f32 %v4996_v13, %v3479_v54  ;;  %v684_v28 = vmul.f32 %v4996_v13, %v3490_v22  ;;  %v3519_v46 = vadd.f32 %v5016_v29, %v580_v34  ;;  %v5018_v60 = vld [vmem:[#allocation8_spill] sm:$0xff]  ;;  %v5023_v13 = vld [vmem:[#allocation23_spill] sm:$0xff]  ;;  %v5024_v29 = vld [vmem:[#allocation26_spill] sm:$0xff] }
  0x56   : > { %v3522_v49 = vadd.f32 %v5018_v60, %v581_v57  ;;  %v5020_v8 = vld [vmem:[#allocation12_spill] sm:$0xff]  ;;  %v3534_v22 = vadd.f32 %v5023_v13, %v585_v11  ;;  %v3537_v34 = vadd.f32 %v5024_v29, %v586_v63  ;;  %v5026_v60 = vld [vmem:[#allocation34_spill] sm:$0xff]  ;;  %v3554_v11 = vadd.f32 %v665_v59, %v592_v20 }
  0x57   : > { %5017 = vst [vmem:[#allocation58_spill] sm:$0xff] %v3519_v46  ;;  %v3525_v23 = vadd.f32 %v5020_v8, %v582_v38  ;;  %v5021_v6 = vld [vmem:[#allocation16_spill] sm:$0xff]  ;;  %v5025_v46 = vld [vmem:[#allocation30_spill] sm:$0xff]  ;;  %v3556_v13 = vadd.f32 %v666_v52, %v593_v56  ;;  %v3558_v63 = vadd.f32 %v667_v5, %v594_v33  ;;  %v3568_v29 = vadd.f32 %v672_v37, %v599_v27  ;;  %v5042_v52 = vld [vmem:[#allocation29_spill] sm:$0xff] }
  0x58   : > { %5019 = vst [vmem:[#allocation62_spill] sm:$0xff] %v3522_v49  ;;  %v3528_v14 = vadd.f32 %v5021_v6, %v583_v3  ;;  %v5022_v21 = vld [vmem:[#allocation20_spill] sm:$0xff]  ;;  %v3540_v57 = vadd.f32 %v5025_v46, %v587_v50  ;;  %v3543_v49 = vadd.f32 %v5026_v60, %v588_v32  ;;  %v5027_v38 = vld [vmem:[#allocation38_spill] sm:$0xff]  ;;  %v3560_v50 = vadd.f32 %v668_v17, %v595_v18  ;;  %v5043_v5 = vld [vmem:[#allocation31_spill] sm:$0xff] }
  0x59   : > { %v3531_v54 = vadd.f32 %v5022_v21, %v584_v51  ;;  %v3546_v8 = vadd.f32 %v5027_v38, %v589_v35  ;;  %v5028_v3 = vld [vmem:[#allocation42_spill] sm:$0xff]  ;;  %v3562_v46 = vadd.f32 %v669_v24, %v596_v26  ;;  %v3564_v32 = vadd.f32 %v670_v40, %v597_v47  ;;  %v5041_v59 = vld [vmem:[#allocation28_spill] sm:$0xff]  ;;  %v5045_v24 = vld [vmem:[#allocation33_spill] sm:$0xff] }
  0x5a   : > { %v3549_v6 = vadd.f32 %v5028_v3, %v590_v2  ;;  %v5029_v51 = vld [vmem:[#allocation46_spill] sm:$0xff]  ;;  %v3566_v35 = vadd.f32 %v671_v39, %v598_v1  ;;  %v3570_v2 = vadd.f32 %v673_v15, %v600_v10  ;;  %v3574_v20 = vadd.f32 %v675_v36, %v602_v45  ;;  %v5044_v17 = vld [vmem:[#allocation32_spill] sm:$0xff]  ;;  %v5046_v40 = vld [vmem:[#allocation35_spill] sm:$0xff] }
  0x5b   : > { %v3552_v21 = vadd.f32 %v5029_v51, %v591_v62  ;;  %v3572_v62 = vadd.f32 %v674_v44, %v601_v16  ;;  %v2216_v56 = vld [vmem:[%s4774_s1 + $0x4] ss:$0 sm:$0xff]  ;;  %v3579_v33 = vadd.f32 %v676_v55, %v603_v48  ;;  %v3581_v18 = vadd.f32 %v677_v61, %v604_v53  ;;  %v5050_v44 = vld [vmem:[#allocation40_spill] sm:$0xff]  ;;  %v5051_v55 = vld [vmem:[#allocation41_spill] sm:$0xff] }
  0x5c   : > { %5031 = vst [vmem:[#allocation73_spill] sm:$0xff] %v3574_v20  ;;  %v3583_v26 = vadd.f32 %v678_v31, %v605_v41  ;;  %v3585_v47 = vadd.f32 %v679_v25, %v606_v42  ;;  %v3587_v1 = vadd.f32 %v680_v0, %v607_v43  ;;  %v3589_v27 = vadd.f32 %v681_v4, %v608_v19  ;;  %v5052_v31 = vld [vmem:[#allocation43_spill] sm:$0xff]  ;;  %v5053_v0 = vld [vmem:[#allocation44_spill] sm:$0xff] }
  0x5d   : > { %5030 = vst [vmem:[#allocation72_spill] sm:$0xff] %v3572_v62  ;;  %5032 = vst [vmem:[#allocation77_spill] sm:$0xff] %v3579_v33  ;;  %v3591_v10 = vadd.f32 %v682_v9, %v609_v58  ;;  %v3593_v16 = vadd.f32 %v683_v30, %v610_v12  ;;  %v3595_v45 = vadd.f32 %v684_v28, %v611_v7  ;;  %v5047_v58 = vld [vmem:[#allocation36_spill] sm:$0xff]  ;;  %v5048_v12 = vld [vmem:[#allocation37_spill] sm:$0xff] }
  0x5e   : > { %5033 = vst [vmem:[#allocation78_spill] sm:$0xff] %v3581_v18  ;;  %5034 = vst [vmem:[#allocation79_spill] sm:$0xff] %v3583_v26  ;;  %v757_v48 = vmul.f32 %v2216_v56, %v5041_v59  ;;  %v758_v53 = vmul.f32 %v2216_v56, %v5042_v52  ;;  %v759_v41 = vmul.f32 %v2216_v56, %v5043_v5  ;;  %v5049_v7 = vld [vmem:[#allocation39_spill] sm:$0xff]  ;;  %v5054_v9 = vld [vmem:[#allocation45_spill] sm:$0xff] }
  0x5f   : > { %5035 = vst [vmem:[#allocation80_spill] sm:$0xff] %v3585_v47  ;;  %5036 = vst [vmem:[#allocation84_spill] sm:$0xff] %v3587_v1  ;;  %v760_v42 = vmul.f32 %v2216_v56, %v5044_v17  ;;  %v761_v43 = vmul.f32 %v2216_v56, %v5045_v24  ;;  %v762_v19 = vmul.f32 %v2216_v56, %v5046_v40  ;;  %v5055_v28 = vld [vmem:[#allocation47_spill] sm:$0xff]  ;;  %v5057_v3 = vld [vmem:[#allocation48_spill] sm:$0xff] }
  0x60   : > { %5037 = vst [vmem:[#allocation85_spill] sm:$0xff] %v3589_v27  ;;  %5038 = vst [vmem:[#allocation86_spill] sm:$0xff] %v3591_v10  ;;  %v763_v39 = vmul.f32 %v2216_v56, %v5047_v58  ;;  %v764_v37 = vmul.f32 %v2216_v56, %v5048_v12  ;;  %v765_v15 = vmul.f32 %v2216_v56, %v5049_v7  ;;  %v3613_v38 = vld [vmem:[%s2780_s14 + $0x181] sm:$0xff]  ;;  %v5058_v59 = vld [vmem:[#allocation49_spill] sm:$0xff] }
  0x61   : > { %5039 = vst [vmem:[#allocation87_spill] sm:$0xff] %v3593_v16  ;;  %5040 = vst [vmem:[#allocation91_spill] sm:$0xff] %v3595_v45  ;;  %v766_v36 = vmul.f32 %v2216_v56, %v5050_v44  ;;  %v767_v61 = vmul.f32 %v2216_v56, %v5051_v55  ;;  %v768_v25 = vmul.f32 %v2216_v56, %v5052_v31  ;;  %v5059_v5 = vld [vmem:[#allocation51_spill] sm:$0xff]  ;;  %v5060_v24 = vld [vmem:[#allocation52_spill] sm:$0xff] }
  0x62   : > { %v769_v4 = vmul.f32 %v2216_v56, %v5053_v0  ;;  %v770_v30 = vmul.f32 %v2216_v56, %v5054_v9  ;;  %v771_v60 = vmul.f32 %v2216_v56, %v5055_v28  ;;  %5056 = vst [vmem:[#allocation3_spill] sm:$0xff] %v3613_v38  ;;  %v772_v51 = vmul.f32 %v2216_v56, %v5057_v3  ;;  %v3620_v58 = vld [vmem:[%s2780_s14 + $0x189] sm:$0xff]  ;;  %v5062_v12 = vld [vmem:[#allocation53_spill] sm:$0xff]  ;;  %v5072_v33 = vld [vmem:[#allocation66_spill] sm:$0xff] }
  0x63   : > { %v773_v52 = vmul.f32 %v2216_v56, %v5058_v59  ;;  %v774_v17 = vmul.f32 %v2216_v56, %v5059_v5  ;;  %v775_v40 = vmul.f32 %v2216_v56, %v5060_v24  ;;  %5061 = vst [vmem:[#allocation2_spill] sm:$0xff] %v3620_v58  ;;  %v776_v7 = vmul.f32 %v2216_v56, %v5062_v12  ;;  %v5063_v44 = vld [vmem:[#allocation55_spill] sm:$0xff]  ;;  %v5064_v31 = vld [vmem:[#allocation56_spill] sm:$0xff]  ;;  %v5065_v9 = vld [vmem:[#allocation57_spill] sm:$0xff] }
  0x64   : > { %v777_v55 = vmul.f32 %v2216_v56, %v5063_v44  ;;  %v778_v0 = vmul.f32 %v2216_v56, %v5064_v31  ;;  %v779_v28 = vmul.f32 %v2216_v56, %v5065_v9  ;;  %v5066_v45 = vld [vmem:[#allocation59_spill] sm:$0xff]  ;;  %v5067_v10 = vld [vmem:[#allocation60_spill] sm:$0xff]  ;;  %v5068_v27 = vld [vmem:[#allocation61_spill] sm:$0xff]  ;;  %v786_v12 = vmul.f32 %v2216_v56, %v5072_v33 }
  0x65   : > { %v780_v16 = vmul.f32 %v2216_v56, %v5066_v45  ;;  %v781_v3 = vmul.f32 %v2216_v56, %v5067_v10  ;;  %v782_v59 = vmul.f32 %v2216_v56, %v5068_v27  ;;  %v5069_v1 = vld [vmem:[#allocation63_spill] sm:$0xff]  ;;  %v5070_v47 = vld [vmem:[#allocation64_spill] sm:$0xff]  ;;  %v5071_v26 = vld [vmem:[#allocation65_spill] sm:$0xff]  ;;  %v787_v44 = vmul.f32 %v2216_v56, %v3613_v38 }
  0x66   : > { %v783_v5 = vmul.f32 %v2216_v56, %v5069_v1  ;;  %v784_v24 = vmul.f32 %v2216_v56, %v5070_v47  ;;  %v785_v18 = vmul.f32 %v2216_v56, %v5071_v26  ;;  %v788_v31 = vmul.f32 %v2216_v56, %v3620_v58  ;;  %v5073_v20 = vld [vmem:[#allocation58_spill] sm:$0xff]  ;;  %v3757_v58 = vld [vmem:[%s2780_s14 + $0x18a] sm:$0xff] }
  0x67   : > { %v3636_v9 = vadd.f32 %v757_v48, %v5073_v20  ;;  %v5074_v45 = vld [vmem:[#allocation62_spill] sm:$0xff]  ;;  %v3642_v27 = vadd.f32 %v759_v41, %v3525_v23  ;;  %v3645_v1 = vadd.f32 %v760_v42, %v3528_v14  ;;  %v3648_v26 = vadd.f32 %v761_v43, %v3531_v54  ;;  %5117 = vst [vmem:[#allocation21_spill] sm:$0xff] %v3757_v58 }
  0x68   : > { %v3639_v62 = vadd.f32 %v758_v53, %v5074_v45  ;;  %v3651_v33 = vadd.f32 %v762_v19, %v3534_v22  ;;  %v3654_v56 = vadd.f32 %v763_v39, %v3537_v34  ;;  %v3657_v20 = vadd.f32 %v764_v37, %v3540_v57  ;;  %v5087_v19 = vld [vmem:[#allocation84_spill] sm:$0xff]  ;;  %v5089_v37 = vld [vmem:[#allocation85_spill] sm:$0xff]  ;;  %v5119_v38 = vld [vmem:[#allocation98_spill] sm:$0xff] }
  0x69   : > { %v3660_v47 = vadd.f32 %v765_v15, %v3543_v49  ;;  %v3663_v23 = vadd.f32 %v766_v36, %v3546_v8  ;;  %v3666_v14 = vadd.f32 %v767_v61, %v3549_v6  ;;  %v3669_v54 = vadd.f32 %v768_v25, %v3552_v21  ;;  %v5091_v36 = vld [vmem:[#allocation86_spill] sm:$0xff] }
  0x6a   : > { %v3672_v22 = vadd.f32 %v769_v4, %v3554_v11  ;;  %v3675_v34 = vadd.f32 %v770_v30, %v3556_v13  ;;  %v3678_v57 = vadd.f32 %v771_v60, %v3558_v63  ;;  %v3681_v49 = vadd.f32 %v772_v51, %v3560_v50  ;;  %v5075_v63 = vld [vmem:[#allocation72_spill] sm:$0xff]  ;;  %v5077_v50 = vld [vmem:[#allocation73_spill] sm:$0xff]  ;;  %v5095_v4 = vld [vmem:[#allocation91_spill] sm:$0xff] }
  0x6b   : > { %v3684_v8 = vadd.f32 %v773_v52, %v3562_v46  ;;  %v3687_v6 = vadd.f32 %v774_v17, %v3564_v32  ;;  %v3690_v21 = vadd.f32 %v775_v40, %v3566_v35  ;;  %v3693_v11 = vadd.f32 %v776_v7, %v3568_v29  ;;  %v2250_v46 = vld [vmem:[%s4774_s1 + $0x5] ss:$0 sm:$0xff]  ;;  %v5079_v32 = vld [vmem:[#allocation77_spill] sm:$0xff]  ;;  %v5083_v29 = vld [vmem:[#allocation79_spill] sm:$0xff] }
  0x6c   : > { %v3696_v13 = vadd.f32 %v777_v55, %v3570_v2  ;;  %v3699_v10 = vadd.f32 %v778_v0, %v5075_v63  ;;  %v3702_v48 = vadd.f32 %v779_v28, %v5077_v50  ;;  %v3708_v53 = vadd.f32 %v780_v16, %v5079_v32  ;;  %v5081_v35 = vld [vmem:[#allocation78_spill] sm:$0xff]  ;;  %v5085_v2 = vld [vmem:[#allocation80_spill] sm:$0xff]  ;;  %v5093_v16 = vld [vmem:[#allocation87_spill] sm:$0xff] }
  0x6d   : > { %v3711_v41 = vadd.f32 %v781_v3, %v5081_v35  ;;  %v3714_v42 = vadd.f32 %v782_v59, %v5083_v29  ;;  %v3717_v43 = vadd.f32 %v783_v5, %v5085_v2  ;;  %v3720_v39 = vadd.f32 %v784_v24, %v5087_v19  ;;  %v5097_v60 = vld [vmem:[#allocation67_spill] sm:$0xff]  ;;  %v5098_v52 = vld [vmem:[#allocation68_spill] sm:$0xff]  ;;  %v5099_v40 = vld [vmem:[#allocation69_spill] sm:$0xff] }
  0x6e   : > { %5076 = vst [vmem:[#allocation5_spill] sm:$0xff] %v3699_v10  ;;  %5078 = vst [vmem:[#allocation6_spill] sm:$0xff] %v3702_v48  ;;  %v3723_v15 = vadd.f32 %v785_v18, %v5089_v37  ;;  %v3726_v61 = vadd.f32 %v786_v12, %v5091_v36  ;;  %v3729_v25 = vadd.f32 %v787_v44, %v5093_v16  ;;  %v5100_v55 = vld [vmem:[#allocation70_spill] sm:$0xff]  ;;  %v5101_v18 = vld [vmem:[#allocation71_spill] sm:$0xff] }
  0x6f   : > { %5080 = vst [vmem:[#allocation7_spill] sm:$0xff] %v3708_v53  ;;  %5082 = vst [vmem:[#allocation9_spill] sm:$0xff] %v3711_v41  ;;  %v3732_v30 = vadd.f32 %v788_v31, %v5095_v4  ;;  %v861_v51 = vmul.f32 %v2250_v46, %v5097_v60  ;;  %v862_v17 = vmul.f32 %v2250_v46, %v5098_v52  ;;  %v5102_v3 = vld [vmem:[#allocation74_spill] sm:$0xff]  ;;  %v5103_v5 = vld [vmem:[#allocation75_spill] sm:$0xff] }
  0x70   : > { %5084 = vst [vmem:[#allocation10_spill] sm:$0xff] %v3714_v42  ;;  %5086 = vst [vmem:[#allocation11_spill] sm:$0xff] %v3717_v43  ;;  %v863_v7 = vmul.f32 %v2250_v46, %v5099_v40  ;;  %v864_v0 = vmul.f32 %v2250_v46, %v5100_v55  ;;  %v865_v28 = vmul.f32 %v2250_v46, %v5101_v18  ;;  %v5104_v12 = vld [vmem:[#allocation76_spill] sm:$0xff]  ;;  %v5105_v31 = vld [vmem:[#allocation81_spill] sm:$0xff] }
  0x71   : > { %5088 = vst [vmem:[#allocation13_spill] sm:$0xff] %v3720_v39  ;;  %5090 = vst [vmem:[#allocation14_spill] sm:$0xff] %v3723_v15  ;;  %v866_v59 = vmul.f32 %v2250_v46, %v5102_v3  ;;  %v867_v24 = vmul.f32 %v2250_v46, %v5103_v5  ;;  %v868_v44 = vmul.f32 %v2250_v46, %v5104_v12  ;;  %v5106_v63 = vld [vmem:[#allocation82_spill] sm:$0xff]  ;;  %v5107_v32 = vld [vmem:[#allocation83_spill] sm:$0xff] }
  0x72   : > { %5092 = vst [vmem:[#allocation15_spill] sm:$0xff] %v3726_v61  ;;  %5094 = vst [vmem:[#allocation17_spill] sm:$0xff] %v3729_v25  ;;  %v869_v45 = vmul.f32 %v2250_v46, %v5105_v31  ;;  %v870_v50 = vmul.f32 %v2250_v46, %v5106_v63  ;;  %v871_v35 = vmul.f32 %v2250_v46, %v5107_v32  ;;  %v5108_v29 = vld [vmem:[#allocation88_spill] sm:$0xff]  ;;  %v5109_v19 = vld [vmem:[#allocation89_spill] sm:$0xff] }
  0x73   : > { %5096 = vst [vmem:[#allocation18_spill] sm:$0xff] %v3732_v30  ;;  %v872_v2 = vmul.f32 %v2250_v46, %v5108_v29  ;;  %v873_v37 = vmul.f32 %v2250_v46, %v5109_v19  ;;  %v5110_v36 = vld [vmem:[#allocation90_spill] sm:$0xff]  ;;  %v5111_v4 = vld [vmem:[#allocation92_spill] sm:$0xff]  ;;  %v5113_v40 = vld [vmem:[#allocation93_spill] sm:$0xff]  ;;  %v881_v19 = vmul.f32 %v2250_v46, %v5119_v38 }
  0x74   : > { %v874_v16 = vmul.f32 %v2250_v46, %v5110_v36  ;;  %v875_v60 = vmul.f32 %v2250_v46, %v5111_v4  ;;  %v3750_v52 = vld [vmem:[%s2780_s14 + $0x182] sm:$0xff]  ;;  %v876_v55 = vmul.f32 %v2250_v46, %v5113_v40  ;;  %v5116_v31 = vld [vmem:[#allocation96_spill] sm:$0xff]  ;;  %v5118_v32 = vld [vmem:[#allocation97_spill] sm:$0xff] }
  0x75   : > { %5112 = vst [vmem:[#allocation19_spill] sm:$0xff] %v3750_v52  ;;  %v5114_v18 = vld [vmem:[#allocation94_spill] sm:$0xff]  ;;  %v5115_v5 = vld [vmem:[#allocation95_spill] sm:$0xff]  ;;  %v879_v63 = vmul.f32 %v2250_v46, %v5116_v31  ;;  %v880_v29 = vmul.f32 %v2250_v46, %v5118_v32  ;;  %v5121_v25 = vld [vmem:[#allocation100_spill] sm:$0xff]  ;;  %v891_v38 = vmul.f32 %v2250_v46, %v3750_v52 }
  0x76   : > { %v877_v3 = vmul.f32 %v2250_v46, %v5114_v18  ;;  %v878_v12 = vmul.f32 %v2250_v46, %v5115_v5  ;;  %v5120_v30 = vld [vmem:[#allocation99_spill] sm:$0xff]  ;;  %v883_v4 = vmul.f32 %v2250_v46, %v5121_v25  ;;  %v5122_v61 = vld [vmem:[#allocation101_spill] sm:$0xff]  ;;  %v5123_v39 = vld [vmem:[#allocation102_spill] sm:$0xff]  ;;  %v3773_v25 = vadd.f32 %v861_v51, %v3636_v9 }
  0x77   : > { %v882_v36 = vmul.f32 %v2250_v46, %v5120_v30  ;;  %v884_v15 = vmul.f32 %v2250_v46, %v5122_v61  ;;  %v885_v40 = vmul.f32 %v2250_v46, %v5123_v39  ;;  %v5124_v43 = vld [vmem:[#allocation103_spill] sm:$0xff]  ;;  %v5125_v42 = vld [vmem:[#allocation104_spill] sm:$0xff]  ;;  %v5126_v41 = vld [vmem:[#allocation105_spill] sm:$0xff]  ;;  %v892_v30 = vmul.f32 %v2250_v46, %v3757_v58 }
  0x78   : > { %v886_v18 = vmul.f32 %v2250_v46, %v5124_v43  ;;  %v887_v5 = vmul.f32 %v2250_v46, %v5125_v42  ;;  %v888_v31 = vmul.f32 %v2250_v46, %v5126_v41  ;;  %v5127_v53 = vld [vmem:[#allocation106_spill] sm:$0xff]  ;;  %v5128_v10 = vld [vmem:[#allocation107_spill] sm:$0xff]  ;;  %v3776_v39 = vadd.f32 %v862_v17, %v3639_v62  ;;  %v2254_v61 = vld [vmem:[%s2780_s14 + $0x50] sm:$0xff] }
  0x79   : > { %v889_v48 = vmul.f32 %v2250_v46, %v5127_v53  ;;  %v890_v32 = vmul.f32 %v2250_v46, %v5128_v10  ;;  %v3779_v42 = vadd.f32 %v863_v7, %v3642_v27  ;;  %v3782_v53 = vadd.f32 %v864_v0, %v3645_v1  ;;  %v2253_v43 = vld [vmem:[%s2780_s14 + $0x48] sm:$0xff]  ;;  %v2255_v51 = vld [vmem:[%s2780_s14 + $0x60] sm:$0xff] }
  0x7a   : > { %v3785_v10 = vadd.f32 %v865_v28, %v3648_v26  ;;  %v3788_v46 = vadd.f32 %v866_v59, %v3651_v33  ;;  %v3791_v9 = vadd.f32 %v867_v24, %v3654_v56  ;;  %v3794_v41 = vadd.f32 %v868_v44, %v3657_v20  ;;  %v2256_v17 = vld [vmem:[%s2780_s14 + $0x68] sm:$0xff]  ;;  %v2258_v59 = vld [vmem:[%s2780_s14 + $0x80] sm:$0xff]  ;;  %v2259_v24 = vld [vmem:[%s2780_s14 + $0x90] sm:$0xff] }
  0x7b   : > { %v3797_v62 = vadd.f32 %v869_v45, %v3660_v47  ;;  %v3800_v27 = vadd.f32 %v870_v50, %v3663_v23  ;;  %v3803_v1 = vadd.f32 %v871_v35, %v3666_v14  ;;  %v3806_v26 = vadd.f32 %v872_v2, %v3669_v54  ;;  %v2251_v47 = vld [vmem:[%s2780_s14 + $0x30] sm:$0xff]  ;;  %v2252_v23 = vld [vmem:[%s2780_s14 + $0x38] sm:$0xff]  ;;  %v3823_v14 = vld [vmem:[%s4774_s1 + $0x6] ss:$0 sm:$0xff] }
  0x7c   : > { %v3809_v33 = vadd.f32 %v873_v37, %v3672_v22  ;;  %v3812_v56 = vadd.f32 %v874_v16, %v3675_v34  ;;  %v3815_v20 = vadd.f32 %v875_v60, %v3678_v57  ;;  %v3826_v54 = vadd.f32 %v876_v55, %v3681_v49  ;;  %v5132_v44 = vld [vmem:[#allocation7_spill] sm:$0xff]  ;;  %v5136_v50 = vld [vmem:[#allocation10_spill] sm:$0xff]  ;;  %v2260_v16 = vld [vmem:[%s2780_s14 + $0x98] sm:$0xff] }
  0x7d   : > { %v3829_v22 = vadd.f32 %v877_v3, %v3684_v8  ;;  %v3832_v34 = vadd.f32 %v878_v12, %v3687_v6  ;;  %v3835_v57 = vadd.f32 %v879_v63, %v3690_v21  ;;  %v3841_v7 = vadd.f32 %v880_v29, %v3693_v11  ;;  %v5129_v8 = vld [vmem:[#allocation5_spill] sm:$0xff]  ;;  %v5130_v6 = vld [vmem:[#allocation6_spill] sm:$0xff]  ;;  %v5138_v2 = vld [vmem:[#allocation11_spill] sm:$0xff] }
  0x7e   : > { %v3844_v49 = vadd.f32 %v881_v19, %v3696_v13  ;;  %v3847_v0 = vadd.f32 %v882_v36, %v5129_v8  ;;  %v3850_v28 = vadd.f32 %v883_v4, %v5130_v6  ;;  %v2257_v21 = vld [vmem:[%s2780_s14 + $0x78] sm:$0xff]  ;;  %v3856_v45 = vadd.f32 %v884_v15, %v5132_v44  ;;  %v2261_v60 = vld [vmem:[%s2780_s14 + $0xa8] sm:$0xff]  ;;  %v2262_v55 = vld [vmem:[%s2780_s14 + $0xb0] sm:$0xff] }
  0x7f   : > { %v5134_v11 = vld [vmem:[#allocation9_spill] sm:$0xff]  ;;  %v3862_v35 = vadd.f32 %v886_v18, %v5136_v50  ;;  %v3865_v37 = vadd.f32 %v887_v5, %v5138_v2  ;;  %v5142_v15 = vld [vmem:[#allocation14_spill] sm:$0xff]  ;;  %v5144_v29 = vld [vmem:[#allocation15_spill] sm:$0xff]  ;;  %v974_v58 = vmul.f32 %v3823_v14, %v2259_v24  ;;  %v975_v52 = vmul.f32 %v3823_v14, %v2260_v16 }
  0x80   : > { %5131 = vst [vmem:[#allocation22_spill] sm:$0xff] %v3850_v28  ;;  %5133 = vst [vmem:[#allocation24_spill] sm:$0xff] %v3856_v45  ;;  %v3859_v13 = vadd.f32 %v885_v40, %v5134_v11  ;;  %v5140_v3 = vld [vmem:[#allocation13_spill] sm:$0xff]  ;;  %v3874_v63 = vadd.f32 %v889_v48, %v5142_v15  ;;  %v3877_v19 = vadd.f32 %v890_v32, %v5144_v29  ;;  %v2263_v40 = vld [vmem:[%s2780_s14 + $0xc0] sm:$0xff] }
  0x81   : > { %5137 = vst [vmem:[#allocation27_spill] sm:$0xff] %v3862_v35  ;;  %5139 = vst [vmem:[#allocation4_spill] sm:$0xff] %v3865_v37  ;;  %v3871_v12 = vadd.f32 %v888_v31, %v5140_v3  ;;  %v5146_v36 = vld [vmem:[#allocation17_spill] sm:$0xff]  ;;  %v2264_v18 = vld [vmem:[%s2780_s14 + $0xc8] sm:$0xff]  ;;  %v966_v48 = vmul.f32 %v3823_v14, %v2251_v47  ;;  %v967_v32 = vmul.f32 %v3823_v14, %v2252_v23 }
  0x82   : > { %5135 = vst [vmem:[#allocation25_spill] sm:$0xff] %v3859_v13  ;;  %5143 = vst [vmem:[#allocation12_spill] sm:$0xff] %v3874_v63  ;;  %v3880_v4 = vadd.f32 %v891_v38, %v5146_v36  ;;  %v2265_v5 = vld [vmem:[%s2780_s14 + $0xd8] sm:$0xff]  ;;  %v5148_v8 = vld [vmem:[#allocation18_spill] sm:$0xff]  ;;  %v968_v38 = vmul.f32 %v3823_v14, %v2253_v43  ;;  %v969_v15 = vmul.f32 %v3823_v14, %v2254_v61 }
  0x83   : > { %5141 = vst [vmem:[#allocation8_spill] sm:$0xff] %v3871_v12  ;;  %5145 = vst [vmem:[#allocation16_spill] sm:$0xff] %v3877_v19  ;;  %v3886_v6 = vadd.f32 %v892_v30, %v5148_v8  ;;  %v2266_v31 = vld [vmem:[%s2780_s14 + $0xe0] sm:$0xff]  ;;  %v2267_v44 = vld [vmem:[%s2780_s14 + $0xf0] sm:$0xff]  ;;  %v970_v30 = vmul.f32 %v3823_v14, %v2255_v51  ;;  %v971_v29 = vmul.f32 %v3823_v14, %v2256_v17 }
  0x84   : > { %5147 = vst [vmem:[#allocation20_spill] sm:$0xff] %v3880_v4  ;;  %v2268_v11 = vld [vmem:[%s2780_s14 + $0xf8] sm:$0xff]  ;;  %v2269_v50 = vld [vmem:[%s2780_s14 + $0x108] sm:$0xff]  ;;  %v2270_v2 = vld [vmem:[%s2780_s14 + $0x110] sm:$0xff]  ;;  %v972_v36 = vmul.f32 %v3823_v14, %v2257_v21  ;;  %v973_v43 = vmul.f32 %v3823_v14, %v2258_v59  ;;  %v976_v61 = vmul.f32 %v3823_v14, %v2261_v60  ;;  %v977_v17 = vmul.f32 %v3823_v14, %v2262_v55 }
  0x85   : > { %5149 = vst [vmem:[#allocation23_spill] sm:$0xff] %v3886_v6  ;;  %v2271_v3 = vld [vmem:[%s2780_s14 + $0x120] sm:$0xff]  ;;  %v2272_v47 = vld [vmem:[%s2780_s14 + $0x128] sm:$0xff]  ;;  %v2273_v23 = vld [vmem:[%s2780_s14 + $0x138] sm:$0xff]  ;;  %v978_v21 = vmul.f32 %v3823_v14, %v2263_v40  ;;  %v979_v19 = vmul.f32 %v3823_v14, %v2264_v18  ;;  %v980_v63 = vmul.f32 %v3823_v14, %v2265_v5  ;;  %v981_v24 = vmul.f32 %v3823_v14, %v2266_v31 }
  0x86   : > { %v2274_v8 = vld [vmem:[%s2780_s14 + $0x140] sm:$0xff]  ;;  %v2275_v6 = vld [vmem:[%s2780_s14 + $0x150] sm:$0xff]  ;;  %v2276_v51 = vld [vmem:[%s2780_s14 + $0x158] sm:$0xff]  ;;  %v982_v37 = vmul.f32 %v3823_v14, %v2267_v44  ;;  %v983_v16 = vmul.f32 %v3823_v14, %v2268_v11  ;;  %v984_v60 = vmul.f32 %v3823_v14, %v2269_v50  ;;  %v985_v13 = vmul.f32 %v3823_v14, %v2270_v2 }
  0x87   : > { %v2277_v4 = vld [vmem:[%s2780_s14 + $0x168] sm:$0xff]  ;;  %v2278_v12 = vld [vmem:[%s2780_s14 + $0x170] sm:$0xff]  ;;  %v2281_v59 = vld [vmem:[%s2780_s14 + $0x198] sm:$0xff]  ;;  %v986_v55 = vmul.f32 %v3823_v14, %v2271_v3  ;;  %v987_v40 = vmul.f32 %v3823_v14, %v2272_v47  ;;  %v988_v18 = vmul.f32 %v3823_v14, %v2273_v23  ;;  %v989_v5 = vmul.f32 %v3823_v14, %v2274_v8 }
  0x88   : > { %v2282_v35 = vld [vmem:[%s2780_s14 + $0x1a0] sm:$0xff]  ;;  %v990_v45 = vmul.f32 %v3823_v14, %v2275_v6  ;;  %v991_v31 = vmul.f32 %v3823_v14, %v2276_v51  ;;  %v992_v44 = vmul.f32 %v3823_v14, %v2277_v4  ;;  %v993_v11 = vmul.f32 %v3823_v14, %v2278_v12 }
  0x89   : > { %v5150_v50 = vld [vmem:[#allocation50_spill] sm:$0xff]  ;;  %v996_v47 = vmul.f32 %v3823_v14, %v2281_v59  ;;  %v997_v23 = vmul.f32 %v3823_v14, %v2282_v35  ;;  %v3938_v8 = vadd.f32 %v966_v48, %v3773_v25  ;;  %v3941_v6 = vadd.f32 %v967_v32, %v3776_v39 }
  0x8a   : > { %v994_v28 = vmul.f32 %v3823_v14, %v5150_v50  ;;  %v5151_v2 = vld [vmem:[#allocation54_spill] sm:$0xff]  ;;  %v3944_v12 = vadd.f32 %v968_v38, %v3779_v42  ;;  %v3947_v4 = vadd.f32 %v969_v15, %v3782_v53  ;;  %v3950_v51 = vadd.f32 %v970_v30, %v3785_v10  ;;  %v2293_v38 = vld [vmem:[%s2780_s14 + $0x91] sm:$0xff] }
  0x8b   : > { %v995_v3 = vmul.f32 %v3823_v14, %v5151_v2  ;;  %v3953_v14 = vadd.f32 %v971_v29, %v3788_v46  ;;  %v3956_v25 = vadd.f32 %v972_v36, %v3791_v9  ;;  %v3959_v35 = vadd.f32 %v973_v43, %v3794_v41  ;;  %v2285_v41 = vld [vmem:[%s2780_s14 + $0x31] sm:$0xff]  ;;  %v2292_v32 = vld [vmem:[%s2780_s14 + $0x81] sm:$0xff]  ;;  %v2294_v43 = vld [vmem:[%s2780_s14 + $0x99] sm:$0xff] }
  0x8c   : > { %v3962_v39 = vadd.f32 %v974_v58, %v3797_v62  ;;  %v3965_v42 = vadd.f32 %v975_v52, %v3800_v27  ;;  %v3968_v53 = vadd.f32 %v976_v61, %v3803_v1  ;;  %v3971_v10 = vadd.f32 %v977_v17, %v3806_v26  ;;  %v2286_v52 = vld [vmem:[%s2780_s14 + $0x39] sm:$0xff]  ;;  %v2287_v62 = vld [vmem:[%s2780_s14 + $0x49] sm:$0xff]  ;;  %v3988_v27 = vld [vmem:[%s4774_s1 + $0x7] ss:$0 sm:$0xff] }
  0x8d   : > { %v3974_v46 = vadd.f32 %v978_v21, %v3809_v33  ;;  %v3977_v9 = vadd.f32 %v979_v19, %v3812_v56  ;;  %v3980_v58 = vadd.f32 %v980_v63, %v3815_v20  ;;  %v3991_v1 = vadd.f32 %v981_v24, %v3826_v54  ;;  %v2288_v20 = vld [vmem:[%s2780_s14 + $0x51] sm:$0xff]  ;;  %v2289_v63 = vld [vmem:[%s2780_s14 + $0x61] sm:$0xff]  ;;  %v2290_v19 = vld [vmem:[%s2780_s14 + $0x69] sm:$0xff] }
  0x8e   : > { %v3994_v26 = vadd.f32 %v982_v37, %v3829_v22  ;;  %v3997_v33 = vadd.f32 %v983_v16, %v3832_v34  ;;  %v4000_v56 = vadd.f32 %v984_v60, %v3835_v57  ;;  %v4006_v48 = vadd.f32 %v985_v13, %v3841_v7  ;;  %v5152_v34 = vld [vmem:[#allocation22_spill] sm:$0xff]  ;;  %v5153_v15 = vld [vmem:[#allocation24_spill] sm:$0xff]  ;;  %v5155_v7 = vld [vmem:[#allocation25_spill] sm:$0xff] }
  0x8f   : > { %v4009_v54 = vadd.f32 %v986_v55, %v3844_v49  ;;  %v4012_v22 = vadd.f32 %v987_v40, %v3847_v0  ;;  %v4015_v37 = vadd.f32 %v988_v18, %v5152_v34  ;;  %v2291_v57 = vld [vmem:[%s2780_s14 + $0x79] sm:$0xff]  ;;  %v4021_v30 = vadd.f32 %v989_v5, %v5153_v15  ;;  %v5157_v13 = vld [vmem:[#allocation27_spill] sm:$0xff]  ;;  %v5159_v29 = vld [vmem:[#allocation4_spill] sm:$0xff] }
  0x90   : > { %v4024_v49 = vadd.f32 %v990_v45, %v5155_v7  ;;  %v4027_v0 = vadd.f32 %v991_v31, %v5157_v13  ;;  %v4030_v36 = vadd.f32 %v992_v44, %v5159_v29  ;;  %v2295_v61 = vld [vmem:[%s2780_s14 + $0xa9] sm:$0xff]  ;;  %v2296_v17 = vld [vmem:[%s2780_s14 + $0xb1] sm:$0xff]  ;;  %v2297_v18 = vld [vmem:[%s2780_s14 + $0xc1] sm:$0xff]  ;;  %v1073_v29 = vmul.f32 %v3988_v27, %v2288_v20 }
  0x91   : > { %5154 = vst [vmem:[#allocation26_spill] sm:$0xff] %v4021_v30  ;;  %v5161_v21 = vld [vmem:[#allocation8_spill] sm:$0xff]  ;;  %v2299_v31 = vld [vmem:[%s2780_s14 + $0xd9] sm:$0xff]  ;;  %v5169_v44 = vld [vmem:[#allocation23_spill] sm:$0xff]  ;;  %v1080_v20 = vmul.f32 %v3988_v27, %v2295_v61 }
  0x92   : > { %5156 = vst [vmem:[#allocation30_spill] sm:$0xff] %v4024_v49  ;;  %5158 = vst [vmem:[#allocation34_spill] sm:$0xff] %v4027_v0  ;;  %v4036_v59 = vadd.f32 %v993_v11, %v5161_v21  ;;  %v5163_v24 = vld [vmem:[#allocation12_spill] sm:$0xff]  ;;  %v4051_v50 = vadd.f32 %v997_v23, %v5169_v44  ;;  %v2300_v11 = vld [vmem:[%s2780_s14 + $0xe1] sm:$0xff]  ;;  %v1074_v23 = vmul.f32 %v3988_v27, %v2289_v63 }
  0x93   : > { %5160 = vst [vmem:[#allocation38_spill] sm:$0xff] %v4030_v36  ;;  %v4039_v16 = vadd.f32 %v994_v28, %v5163_v24  ;;  %v5165_v45 = vld [vmem:[#allocation16_spill] sm:$0xff]  ;;  %v2302_v34 = vld [vmem:[%s2780_s14 + $0xf9] sm:$0xff]  ;;  %v1070_v28 = vmul.f32 %v3988_v27, %v2285_v41  ;;  %v2305_v13 = vld [vmem:[%s2780_s14 + $0x121] sm:$0xff]  ;;  %v1075_v21 = vmul.f32 %v3988_v27, %v2290_v19  ;;  %v1076_v24 = vmul.f32 %v3988_v27, %v2291_v57 }
  0x94   : > { %5162 = vst [vmem:[#allocation42_spill] sm:$0xff] %v4036_v59  ;;  %v4042_v60 = vadd.f32 %v995_v3, %v5165_v45  ;;  %v5167_v55 = vld [vmem:[#allocation20_spill] sm:$0xff]  ;;  %5170 = vst [vmem:[#allocation31_spill] sm:$0xff] %v4051_v50  ;;  %v1071_v3 = vmul.f32 %v3988_v27, %v2286_v52  ;;  %v2307_v52 = vld [vmem:[%s2780_s14 + $0x139] sm:$0xff]  ;;  %v1079_v44 = vmul.f32 %v3988_v27, %v2294_v43 }
  0x95   : > { %5164 = vst [vmem:[#allocation46_spill] sm:$0xff] %v4039_v16  ;;  %v4045_v40 = vadd.f32 %v996_v47, %v5167_v55  ;;  %v2298_v5 = vld [vmem:[%s2780_s14 + $0xc9] sm:$0xff]  ;;  %v2301_v2 = vld [vmem:[%s2780_s14 + $0xf1] sm:$0xff]  ;;  %v1072_v47 = vmul.f32 %v3988_v27, %v2287_v62  ;;  %v2308_v45 = vld [vmem:[%s2780_s14 + $0x141] sm:$0xff]  ;;  %v1077_v62 = vmul.f32 %v3988_v27, %v2292_v32  ;;  %v1078_v55 = vmul.f32 %v3988_v27, %v2293_v38 }
  0x96   : > { %5166 = vst [vmem:[#allocation28_spill] sm:$0xff] %v4042_v60  ;;  %v2303_v15 = vld [vmem:[%s2780_s14 + $0x109] sm:$0xff]  ;;  %v2304_v7 = vld [vmem:[%s2780_s14 + $0x111] sm:$0xff]  ;;  %v2310_v63 = vld [vmem:[%s2780_s14 + $0x159] sm:$0xff]  ;;  %v1081_v19 = vmul.f32 %v3988_v27, %v2296_v17  ;;  %v1082_v57 = vmul.f32 %v3988_v27, %v2297_v18  ;;  %v1083_v60 = vmul.f32 %v3988_v27, %v2298_v5  ;;  %v1084_v16 = vmul.f32 %v3988_v27, %v2299_v31 }
  0x97   : > { %5168 = vst [vmem:[#allocation29_spill] sm:$0xff] %v4045_v40  ;;  %v2306_v41 = vld [vmem:[%s2780_s14 + $0x129] sm:$0xff]  ;;  %v2309_v50 = vld [vmem:[%s2780_s14 + $0x151] sm:$0xff]  ;;  %v2315_v59 = vld [vmem:[%s2780_s14 + $0x199] sm:$0xff]  ;;  %v1085_v38 = vmul.f32 %v3988_v27, %v2300_v11  ;;  %v1086_v43 = vmul.f32 %v3988_v27, %v2301_v2  ;;  %v1087_v61 = vmul.f32 %v3988_v27, %v2302_v34  ;;  %v1088_v36 = vmul.f32 %v3988_v27, %v2303_v15 }
  0x98   : > { %v2311_v40 = vld [vmem:[%s2780_s14 + $0x169] sm:$0xff]  ;;  %v2312_v32 = vld [vmem:[%s2780_s14 + $0x171] sm:$0xff]  ;;  %v2316_v0 = vld [vmem:[%s2780_s14 + $0x1a1] sm:$0xff]  ;;  %v1089_v17 = vmul.f32 %v3988_v27, %v2304_v7  ;;  %v1090_v18 = vmul.f32 %v3988_v27, %v2305_v13  ;;  %v1091_v5 = vmul.f32 %v3988_v27, %v2306_v41  ;;  %v1092_v31 = vmul.f32 %v3988_v27, %v2307_v52 }
  0x99   : > { %v1093_v49 = vmul.f32 %v3988_v27, %v2308_v45  ;;  %v1094_v11 = vmul.f32 %v3988_v27, %v2309_v50  ;;  %v1095_v2 = vmul.f32 %v3988_v27, %v2310_v63  ;;  %v4095_v34 = vmul.f32 %v3988_v27, %v2311_v40  ;;  %v2319_v15 = vld [vmem:[%s2780_s14 + $0x32] sm:$0xff]  ;;  %v4101_v7 = vld [vmem:[%s4774_s1 + $0x8] ss:$0 sm:$0xff]  ;;  %v5175_v50 = vld [vmem:[#allocation2_spill] sm:$0xff] }
  0x9a   : > { %v4104_v13 = vmul.f32 %v3988_v27, %v2312_v32  ;;  %v5173_v41 = vld [vmem:[#allocation3_spill] sm:$0xff]  ;;  %v4112_v45 = vmul.f32 %v3988_v27, %v5175_v50  ;;  %v4115_v40 = vmul.f32 %v3988_v27, %v2315_v59  ;;  %v2320_v63 = vld [vmem:[%s2780_s14 + $0x3a] sm:$0xff]  ;;  %v1102_v30 = vadd.f32 %v1070_v28, %v3938_v8  ;;  %v2322_v59 = vld [vmem:[%s2780_s14 + $0x52] sm:$0xff] }
  0x9b   : > { %5171 = vst [vmem:[#allocation32_spill] sm:$0xff] %v4095_v34  ;;  %v4108_v52 = vmul.f32 %v3988_v27, %v5173_v41  ;;  %v4119_v34 = vmul.f32 %v3988_v27, %v2316_v0  ;;  %v1103_v32 = vadd.f32 %v1071_v3, %v3941_v6  ;;  %v1104_v41 = vadd.f32 %v1072_v47, %v3944_v12  ;;  %v2323_v0 = vld [vmem:[%s2780_s14 + $0x62] sm:$0xff]  ;;  %v2324_v28 = vld [vmem:[%s2780_s14 + $0x6a] sm:$0xff] }
  0x9c   : > { %5172 = vst [vmem:[#allocation33_spill] sm:$0xff] %v4104_v13  ;;  %5176 = vst [vmem:[#allocation36_spill] sm:$0xff] %v4112_v45  ;;  %v1105_v13 = vadd.f32 %v1073_v29, %v3947_v4  ;;  %v1106_v50 = vadd.f32 %v1074_v23, %v3950_v51  ;;  %v1107_v45 = vadd.f32 %v1075_v21, %v3953_v14  ;;  %v2326_v29 = vld [vmem:[%s2780_s14 + $0x82] sm:$0xff] }
  0x9d   : > { %5174 = vst [vmem:[#allocation35_spill] sm:$0xff] %v4108_v52  ;;  %5177 = vst [vmem:[#allocation37_spill] sm:$0xff] %v4115_v40  ;;  %v2321_v52 = vld [vmem:[%s2780_s14 + $0x4a] sm:$0xff]  ;;  %v1174_v40 = vmul.f32 %v4101_v7, %v2319_v15  ;;  %v1108_v27 = vadd.f32 %v1076_v24, %v3956_v25  ;;  %v1109_v8 = vadd.f32 %v1077_v62, %v3959_v35  ;;  %v2328_v62 = vld [vmem:[%s2780_s14 + $0x9a] sm:$0xff] }
  0x9e   : > { %v1110_v6 = vadd.f32 %v1078_v55, %v3962_v39  ;;  %v1175_v12 = vmul.f32 %v4101_v7, %v2320_v63  ;;  %v1111_v4 = vadd.f32 %v1079_v44, %v3965_v42  ;;  %v4137_v51 = vadd.f32 %v1080_v20, %v3968_v53  ;;  %v2325_v42 = vld [vmem:[%s2780_s14 + $0x7a] sm:$0xff]  ;;  %v2331_v15 = vld [vmem:[%s2780_s14 + $0xc2] sm:$0xff] }
  0x9f   : > { %v4140_v14 = vadd.f32 %v1081_v19, %v3971_v10  ;;  %v1176_v3 = vmul.f32 %v4101_v7, %v2321_v52  ;;  %v4145_v25 = vadd.f32 %v1082_v57, %v3974_v46  ;;  %v4148_v35 = vadd.f32 %v1083_v60, %v3977_v9  ;;  %v5178_v44 = vld [vmem:[#allocation26_spill] sm:$0xff]  ;;  %v2329_v57 = vld [vmem:[%s2780_s14 + $0xaa] sm:$0xff] }
  0xa0   : > { %v4151_v39 = vadd.f32 %v1084_v16, %v3980_v58  ;;  %v1177_v53 = vmul.f32 %v4101_v7, %v2322_v59  ;;  %v4156_v47 = vadd.f32 %v1085_v38, %v3991_v1  ;;  %v4159_v10 = vadd.f32 %v1086_v43, %v3994_v26  ;;  %v4173_v1 = vld [vmem:[%s4775_s2] ss:$0 sm:$0xff] }
  0xa1   : > { %v1178_v46 = vmul.f32 %v4101_v7, %v2323_v0  ;;  %v1206_v23 = vadd.f32 %v1174_v40, %v1102_v30  ;;  %v4164_v9 = vadd.f32 %v1087_v61, %v3997_v33  ;;  %v4167_v58 = vadd.f32 %v1088_v36, %v4000_v56  ;;  %v2327_v33 = vld [vmem:[%s2780_s14 + $0x92] sm:$0xff]  ;;  %v5180_v43 = vld [vmem:[#allocation34_spill] sm:$0xff] }
  0xa2   : > { %v1179_v16 = vmul.f32 %v4101_v7, %v2324_v28  ;;  %v1207_v60 = vadd.f32 %v1175_v12, %v1103_v32  ;;  %v4176_v26 = vadd.f32 %v1089_v17, %v4006_v48  ;;  %v4179_v30 = vadd.f32 %v1090_v18, %v4009_v54  ;;  %v5179_v54 = vld [vmem:[#allocation30_spill] sm:$0xff] }
  0xa3   : > { %v1180_v56 = vmul.f32 %v4101_v7, %v2325_v42  ;;  %v1208_v36 = vadd.f32 %v1176_v3, %v1104_v41  ;;  %v4184_v21 = vadd.f32 %v1091_v5, %v4012_v22  ;;  %v4187_v24 = vadd.f32 %v1092_v31, %v4015_v37  ;;  %v2330_v37 = vld [vmem:[%s2780_s14 + $0xb2] sm:$0xff]  ;;  %v5181_v5 = vld [vmem:[#allocation38_spill] sm:$0xff] }
  0xa4   : > { %v1181_v55 = vmul.f32 %v4101_v7, %v2326_v29  ;;  %v1209_v48 = vadd.f32 %v1177_v53, %v1105_v13  ;;  %v4192_v20 = vadd.f32 %v1093_v49, %v5178_v44  ;;  %v4195_v19 = vadd.f32 %v1094_v11, %v5179_v54  ;;  %v5182_v31 = vld [vmem:[#allocation32_spill] sm:$0xff]  ;;  %v5183_v40 = vld [vmem:[#allocation42_spill] sm:$0xff]  ;;  %v5184_v63 = vld [vmem:[#allocation33_spill] sm:$0xff] }
  0xa5   : > { %v1210_v38 = vadd.f32 %v1178_v46, %v1106_v50  ;;  %v4199_v22 = vadd.f32 %v4173_v1, %v1206_v23  ;;  %v4202_v61 = vadd.f32 %v1095_v2, %v5180_v43  ;;  %v1182_v17 = vmul.f32 %v4101_v7, %v2327_v33  ;;  %v5185_v0 = vld [vmem:[#allocation46_spill] sm:$0xff]  ;;  %v5186_v12 = vld [vmem:[#allocation35_spill] sm:$0xff] }
  0xa6   : > { %v1211_v18 = vadd.f32 %v1179_v16, %v1107_v45  ;;  %v4207_v49 = vadd.f32 %v4173_v1, %v1207_v60  ;;  %v4211_v11 = vadd.f32 %v5182_v31, %v5181_v5  ;;  %v1183_v13 = vmul.f32 %v4101_v7, %v2328_v62  ;;  %v2332_v45 = vld [vmem:[%s2780_s14 + $0xca] sm:$0xff]  ;;  %v2333_v3 = vld [vmem:[%s2780_s14 + $0xda] sm:$0xff]  ;;  %v2334_v29 = vld [vmem:[%s2780_s14 + $0xe2] sm:$0xff] }
  0xa7   : > { %v1212_v52 = vadd.f32 %v1180_v56, %v1108_v27  ;;  %v4216_v2 = vadd.f32 %v4173_v1, %v1208_v36  ;;  %v4220_v32 = vadd.f32 %v5184_v63, %v5183_v40  ;;  %v1184_v41 = vmul.f32 %v4101_v7, %v2329_v57  ;;  %v5187_v5 = vld [vmem:[#allocation28_spill] sm:$0xff]  ;;  %v5191_v40 = vld [vmem:[#allocation37_spill] sm:$0xff] }
  0xa8   : > { %v1213_v50 = vadd.f32 %v1181_v55, %v1109_v8  ;;  %v4225_v59 = vadd.f32 %v4173_v1, %v1209_v48  ;;  %v4229_v28 = vadd.f32 %v5186_v12, %v5185_v0  ;;  %v1185_v27 = vmul.f32 %v4101_v7, %v2330_v37  ;;  %v5188_v31 = vld [vmem:[#allocation36_spill] sm:$0xff] }
  0xa9   : > { %v4234_v42 = vadd.f32 %v4173_v1, %v1210_v38  ;;  %v2354_v53 = vmul.f32 -1.442695, %v4199_v22  ;;  %v1186_v46 = vmul.f32 %v4101_v7, %v2331_v15  ;;  %v1214_v23 = vadd.f32 %v1182_v17, %v1110_v6 }
  0xaa   : > { %v4240_v8 = vadd.f32 %v4173_v1, %v1211_v18  ;;  %v2355_v16 = vmul.f32 -1.442695, %v4207_v49  ;;  %v1187_v60 = vmul.f32 %v4101_v7, %v2332_v45  ;;  %v1215_v33 = vadd.f32 %v1183_v13, %v1111_v4  ;;  %v2336_v45 = vld [vmem:[%s2780_s14 + $0xfa] sm:$0xff] }
  0xab   : > { %v4245_v56 = vadd.f32 %v4173_v1, %v1212_v52  ;;  %v2356_v36 = vmul.f32 -1.442695, %v4216_v2  ;;  %v1188_v62 = vmul.f32 %v4101_v7, %v2333_v3  ;;  %v1216_v55 = vadd.f32 %v1184_v41, %v4137_v51  ;;  %v2337_v41 = vld [vmem:[%s2780_s14 + $0x10a] sm:$0xff]  ;;  %v2338_v3 = vld [vmem:[%s2780_s14 + $0x112] sm:$0xff] }
  0xac   : > { %v4251_v48 = vadd.f32 %v4173_v1, %v1213_v50  ;;  %v2357_v6 = vmul.f32 -1.442695, %v4225_v59  ;;  %v1189_v44 = vmul.f32 %v4101_v7, %v2334_v29  ;;  %v1217_v54 = vadd.f32 %v1185_v27, %v4140_v14  ;;  %v2339_v27 = vld [vmem:[%s2780_s14 + $0x122] sm:$0xff] }
  0xad   : > { %2539 = vpow2.f32 %v2354_v53  ;;  %v2358_v4 = vmul.f32 -1.442695, %v4234_v42  ;;  %v1218_v57 = vadd.f32 %v1186_v46, %v4145_v25  ;;  %v4259_v38 = vadd.f32 %v4173_v1, %v1214_v23  ;;  %v2340_v46 = vld [vmem:[%s2780_s14 + $0x12a] sm:$0xff]  ;;  %v2341_v23 = vld [vmem:[%s2780_s14 + $0x13a] sm:$0xff] }
  0xae   : > { %2541 = vpow2.f32 %v2355_v16  ;;  %v2359_v51 = vmul.f32 -1.442695, %v4240_v8  ;;  %v1219_v43 = vadd.f32 %v1187_v60, %v4148_v35  ;;  %v4264_v37 = vadd.f32 %v4173_v1, %v1215_v33  ;;  %v2335_v35 = vld [vmem:[%s2780_s14 + $0xf2] sm:$0xff]  ;;  %v2342_v33 = vld [vmem:[%s2780_s14 + $0x142] sm:$0xff] }
  0xaf   : > { %2543 = vpow2.f32 %v2356_v36  ;;  %v2360_v14 = vmul.f32 -1.442695, %v4245_v56  ;;  %v1220_v17 = vadd.f32 %v1188_v62, %v4151_v39  ;;  %v4269_v25 = vadd.f32 %v4173_v1, %v1216_v55  ;;  %v5190_v39 = vld [vmem:[#allocation29_spill] sm:$0xff] }
  0xb0   : > { %2545 = vpow2.f32 %v2357_v6  ;;  %v2361_v18 = vmul.f32 -1.442695, %v4251_v48  ;;  %v4274_v15 = vadd.f32 %v5188_v31, %v5187_v5  ;;  %v1221_v13 = vadd.f32 %v1189_v44, %v4156_v47  ;;  %v5193_v47 = vld [vmem:[#allocation31_spill] sm:$0xff]  ;;  %v2343_v36 = vld [vmem:[%s2780_s14 + $0x152] sm:$0xff] }
  0xb1   : > { %v4279_v52 = vadd.f32 %v4173_v1, %v1217_v54  ;;  %2547 = vpow2.f32 %v2358_v4  ;;  %v4283_v63 = vadd.f32 %v5191_v40, %v5190_v39  ;;  %v4288_v50 = vadd.f32 %v4173_v1, %v1218_v57  ;;  %v2344_v54 = vld [vmem:[%s2780_s14 + $0x15a] sm:$0xff]  ;;  %v2345_v4 = vld [vmem:[%s2780_s14 + $0x16a] sm:$0xff] }
  0xb2   : > { %2549 = vpow2.f32 %v2359_v51  ;;  %v2362_v0 = vmul.f32 -1.442695, %v4259_v38  ;;  %v4293_v12 = vadd.f32 %v4119_v34, %v5193_v47  ;;  %v4298_v53 = vadd.f32 %v4173_v1, %v1219_v43 }
  0xb3   : > { %5189 = vst [vmem:[#allocation39_spill] sm:$0xff] %v4279_v52  ;;  %5192 = vst [vmem:[#allocation40_spill] sm:$0xff] %v4288_v50  ;;  %2551 = vpow2.f32 %v2360_v14  ;;  %v2363_v29 = vmul.f32 -1.442695, %v4264_v37  ;;  %v1190_v16 = vmul.f32 %v4101_v7, %v2335_v35  ;;  %v4305_v60 = vadd.f32 %v4173_v1, %v1220_v17  ;;  %v2346_v17 = vld [vmem:[%s2780_s14 + $0x172] sm:$0xff] }
  0xb4   : > { %5194 = vst [vmem:[#allocation41_spill] sm:$0xff] %v4298_v53  ;;  %2553 = vpow2.f32 %v2361_v18  ;;  %v2364_v34 = vmul.f32 -1.442695, %v4269_v25  ;;  %v1191_v62 = vmul.f32 %v4101_v7, %v2336_v45  ;;  %v1192_v55 = vmul.f32 %v4101_v7, %v2337_v41  ;;  %v2349_v41 = vld [vmem:[%s2780_s14 + $0x19a] sm:$0xff] }
  0xb5   : > { %5195 = vst [vmem:[#allocation43_spill] sm:$0xff] %v4305_v60  ;;  %v4313_v6 = vadd.f32 %v4173_v1, %v1221_v13  ;;  %v2365_v44 = vmul.f32 -1.442695, %v4279_v52  ;;  %v1193_v57 = vmul.f32 %v4101_v7, %v2338_v3  ;;  %v1194_v51 = vmul.f32 %v4101_v7, %v2339_v27 }
  0xb6   : > { %2555 = vpow2.f32 %v2362_v0  ;;  %v2366_v43 = vmul.f32 -1.442695, %v4288_v50  ;;  %v1195_v18 = vmul.f32 %v4101_v7, %v2340_v46  ;;  %v1196_v5 = vmul.f32 %v4101_v7, %v2341_v23 }
  0xb7   : > { %5196 = vst [vmem:[#allocation44_spill] sm:$0xff] %v4313_v6  ;;  %v2540_v14 = vpop.eup %2539  ;;  %2557 = vpow2.f32 %v2363_v29  ;;  %v2367_v31 = vmul.f32 -1.442695, %v4298_v53  ;;  %v1197_v13 = vmul.f32 %v4101_v7, %v2342_v33  ;;  %v1198_v39 = vmul.f32 %v4101_v7, %v2343_v36  ;;  %v2350_v29 = vld [vmem:[%s2780_s14 + $0x1a2] sm:$0xff]  ;;  %v5198_v53 = vld [vmem:[#allocation21_spill] sm:$0xff] }
  0xb8   : > { %v2542_v35 = vpop.eup %2541  ;;  %2559 = vpow2.f32 %v2364_v34  ;;  %v2368_v40 = vmul.f32 -1.442695, %v4305_v60  ;;  %v1199_v0 = vmul.f32 %v4101_v7, %v2344_v54  ;;  %v1200_v47 = vmul.f32 %v4101_v7, %v2345_v4  ;;  %v5197_v36 = vld [vmem:[#allocation19_spill] sm:$0xff] }
  0xb9   : > { %v2544_v45 = vpop.eup %2543  ;;  %2561 = vpow2.f32 %v2365_v44  ;;  %v2369_v3 = vmul.f32 -1.442695, %v4313_v6  ;;  %v1201_v46 = vmul.f32 %v4101_v7, %v2346_v17  ;;  %v1222_v23 = vadd.f32 %v1190_v16, %v4159_v10 }
  0xba   : > { %v2546_v27 = vpop.eup %2545  ;;  %2563 = vpow2.f32 %v2366_v43  ;;  %v1373_v33 = vadd.f32 1.0, %v2540_v14  ;;  %v1202_v60 = vmul.f32 %v4101_v7, %v5197_v36  ;;  %v1203_v54 = vmul.f32 %v4101_v7, %v5198_v53 }
  0xbb   : > { %v2548_v34 = vpop.eup %2547  ;;  %2565 = vpow2.f32 %v2367_v31  ;;  %v1374_v4 = vadd.f32 1.0, %v2542_v35  ;;  %v1204_v6 = vmul.f32 %v4101_v7, %v2349_v41  ;;  %v1223_v50 = vadd.f32 %v1191_v62, %v4164_v9 }
  0xbc   : > { %v2550_v44 = vpop.eup %2549  ;;  %2567 = vpow2.f32 %v2368_v40  ;;  %v1375_v17 = vadd.f32 1.0, %v2544_v45  ;;  %v1205_v10 = vmul.f32 %v4101_v7, %v2350_v29  ;;  %v1224_v16 = vadd.f32 %v1192_v55, %v4167_v58 }
  0xbd   : > { %v2552_v52 = vpop.eup %2551  ;;  %2569 = vpow2.f32 %v2369_v3  ;;  %v1376_v43 = vadd.f32 1.0, %v2546_v27  ;;  %v1225_v36 = vadd.f32 %v1193_v57, %v4176_v26  ;;  %v4345_v53 = vadd.f32 %v4173_v1, %v1222_v23 }
  0xbe   : > { %v2554_v14 = vpop.eup %2553  ;;  %v1377_v31 = vadd.f32 1.0, %v2548_v34  ;;  %2571 = vrcp.f32 %v1373_v33  ;;  %v1226_v35 = vadd.f32 %v1194_v51, %v4179_v30  ;;  %v1227_v9 = vadd.f32 %v1195_v18, %v4184_v21 }
  0xbf   : > { %v1378_v62 = vadd.f32 1.0, %v2550_v44  ;;  %2573 = vrcp.f32 %v1374_v4  ;;  %v1228_v7 = vadd.f32 %v1196_v5, %v4187_v24  ;;  %v4351_v58 = vadd.f32 %v4173_v1, %v1223_v50 }
  0xc0   : > { %v2556_v40 = vpop.eup %2555  ;;  %v1379_v55 = vadd.f32 1.0, %v2552_v52  ;;  %2575 = vrcp.f32 %v1375_v17  ;;  %v1229_v57 = vadd.f32 %v1197_v13, %v4192_v20  ;;  %v1230_v45 = vadd.f32 %v1198_v39, %v4195_v19 }
  0xc1   : > { %v2558_v26 = vpop.eup %2557  ;;  %v1380_v41 = vadd.f32 1.0, %v2554_v14  ;;  %2577 = vrcp.f32 %v1376_v43  ;;  %v4356_v21 = vadd.f32 %v1199_v0, %v4202_v61  ;;  %v4359_v51 = vadd.f32 %v4173_v1, %v1224_v16 }
  0xc2   : > { %v2560_v30 = vpop.eup %2559  ;;  %v2370_v24 = vmul.f32 -1.442695, %v4345_v53  ;;  %2579 = vrcp.f32 %v1377_v31  ;;  %v4363_v52 = vadd.f32 %v1200_v47, %v4211_v11  ;;  %v4366_v20 = vadd.f32 %v1201_v46, %v4220_v32 }
  0xc3   : > { %v2562_v50 = vpop.eup %2561  ;;  %v1381_v19 = vadd.f32 1.0, %v2556_v40  ;;  %2581 = vrcp.f32 %v1378_v62  ;;  %v4369_v5 = vadd.f32 %v1202_v60, %v4229_v28  ;;  %v4372_v61 = vadd.f32 %v4173_v1, %v1225_v36 }
  0xc4   : > { %v2564_v18 = vpop.eup %2563  ;;  %v2371_v13 = vmul.f32 -1.442695, %v4351_v58  ;;  %2583 = vrcp.f32 %v1379_v55  ;;  %v4376_v0 = vadd.f32 %v1203_v54, %v4274_v15  ;;  %v4379_v11 = vadd.f32 %v1204_v6, %v4283_v63 }
  0xc5   : > { %v2566_v39 = vpop.eup %2565  ;;  %v1382_v32 = vadd.f32 1.0, %v2558_v26  ;;  %2585 = vrcp.f32 %v1380_v41  ;;  %v4382_v3 = vadd.f32 %v4173_v1, %v1226_v35  ;;  %v4385_v28 = vadd.f32 %v4173_v1, %v1227_v9 }
  0xc6   : > { %v2568_v47 = vpop.eup %2567  ;;  %2587 = vpow2.f32 %v2370_v24  ;;  %v2372_v60 = vmul.f32 -1.442695, %v4359_v51  ;;  %v4389_v29 = vadd.f32 %v1205_v10, %v4293_v12  ;;  %v4392_v15 = vadd.f32 %v4173_v1, %v1228_v7 }
  0xc7   : > { %v2570_v27 = vpop.eup %2569  ;;  %v1383_v63 = vadd.f32 1.0, %v2560_v30  ;;  %2589 = vrcp.f32 %v1381_v19  ;;  %v4395_v46 = vadd.f32 %v4173_v1, %v1229_v57  ;;  %v2373_v23 = vmul.f32 -1.442695, %v4372_v61 }
  0xc8   : > { %v2572_v6 = vpop.eup %2571  ;;  %2591 = vpow2.f32 %v2371_v13  ;;  %v4399_v34 = vadd.f32 %v4173_v1, %v1230_v45  ;;  %v1384_v54 = vadd.f32 1.0, %v2562_v50  ;;  %v2374_v44 = vmul.f32 -1.442695, %v4382_v3 }
  0xc9   : > { %v2574_v33 = vpop.eup %2573  ;;  %2593 = vrcp.f32 %v1382_v32  ;;  %v4402_v12 = vmul.f32 %v2572_v6, %v4199_v22  ;;  %v2375_v17 = vmul.f32 -1.442695, %v4385_v28  ;;  %v1385_v43 = vadd.f32 1.0, %v2564_v18 }
  0xca   : > { %v2576_v4 = vpop.eup %2575  ;;  %2595 = vpow2.f32 %v2372_v60  ;;  %v4407_v10 = vmul.f32 %v2574_v33, %v4207_v49  ;;  %v1386_v31 = vadd.f32 1.0, %v2566_v39  ;;  %v2376_v55 = vmul.f32 -1.442695, %v4392_v15 }
  0xcb   : > { %v2578_v16 = vpop.eup %2577  ;;  %2597 = vrcp.f32 %v1383_v63  ;;  %v4410_v14 = vmul.f32 %v2576_v4, %v4216_v2  ;;  %v1502_v36 = vsel %vm1501_vm0, %v4402_v12, 0.0  ;;  %v4432_v45 = vadd.f32 %v4173_v1, %v4356_v21 }
  0xcc   : > { %v2580_v22 = vpop.eup %2579  ;;  %2599 = vpow2.f32 %v2373_v23  ;;  %v4415_v35 = vmul.f32 %v2578_v16, %v4225_v59  ;;  %v1503_v9 = vsel %vm1501_vm0, %v4407_v10, 0.0  ;;  %v2377_v24 = vmul.f32 -1.442695, %v4395_v46 }
  0xcd   : > { %v2582_v49 = vpop.eup %2581  ;;  %2601 = vrcp.f32 %v1384_v54  ;;  %v4420_v62 = vmul.f32 %v2580_v22, %v4234_v42  ;;  %v1504_v40 = vadd.f32 %v1503_v9, %v1502_v36  ;;  %v1505_v2 = vsel %vm1501_vm0, %v4410_v14, 0.0 }
  0xce   : > { %v2584_v7 = vpop.eup %2583  ;;  %2603 = vpow2.f32 %v2374_v44  ;;  %v4426_v26 = vmul.f32 %v2582_v49, %v4240_v8  ;;  %v1507_v59 = vsel %vm1501_vm0, %v4415_v35, 0.0  ;;  %v1387_v42 = vadd.f32 1.0, %v2568_v47 }
  0xcf   : > { %v2586_v57 = vpop.eup %2585  ;;  %2605 = vrcp.f32 %v1385_v43  ;;  %v1506_v41 = vadd.f32 %v1505_v2, %v1504_v40  ;;  %v4436_v50 = vmul.f32 %v2584_v7, %v4245_v56  ;;  %v1509_v8 = vsel %vm1501_vm0, %v4420_v62, 0.0 }
  0xd0   : > { %v2588_v30 = vpop.eup %2587  ;;  %2607 = vpow2.f32 %v2375_v17  ;;  %v4442_v18 = vadd.f32 %v4173_v1, %v4363_v52  ;;  %v1388_v21 = vadd.f32 1.0, %v2570_v27  ;;  %v2378_v32 = vmul.f32 -1.442695, %v4399_v34 }
  0xd1   : > { %v2590_v19 = vpop.eup %2589  ;;  %2609 = vrcp.f32 %v1386_v31  ;;  %v1508_v13 = vadd.f32 %v1507_v59, %v1506_v41  ;;  %v4446_v47 = vmul.f32 %v2586_v57, %v4251_v48  ;;  %v1511_v56 = vsel %vm1501_vm0, %v4426_v26, 0.0 }
  0xd2   : > { %v2592_v39 = vpop.eup %2591  ;;  %2611 = vpow2.f32 %v2376_v55  ;;  %v4452_v63 = vadd.f32 %v4173_v1, %v4366_v20  ;;  %v1389_v52 = vadd.f32 1.0, %v2588_v30  ;;  %v2379_v23 = vmul.f32 -1.442695, %v4432_v45 }
  0xd3   : > { %v2594_v60 = vpop.eup %2593  ;;  %2613 = vrcp.f32 %v1387_v42  ;;  %v1510_v27 = vadd.f32 %v1509_v8, %v1508_v13  ;;  %v4456_v33 = vmul.f32 %v2590_v19, %v4259_v38  ;;  %v1513_v48 = vsel %vm1501_vm0, %v4436_v50, 0.0  ;;  %v5199_v42 = vld [vmem:[#allocation39_spill] sm:$0xff]  ;;  %v5200_v13 = vld [vmem:[#allocation40_spill] sm:$0xff] }
  0xd4   : > { %v2596_v6 = vpop.eup %2595  ;;  %2615 = vpow2.f32 %v2377_v24  ;;  %v4462_v4 = vadd.f32 %v4173_v1, %v4369_v5  ;;  %v1390_v20 = vadd.f32 1.0, %v2592_v39  ;;  %v2380_v16 = vmul.f32 -1.442695, %v4442_v18 }
  0xd5   : > { %v2598_v54 = vpop.eup %2597  ;;  %2617 = vrcp.f32 %v1388_v21  ;;  %v1512_v44 = vadd.f32 %v1511_v56, %v1510_v27  ;;  %v4466_v43 = vmul.f32 %v2594_v60, %v4264_v37  ;;  %v1515_v38 = vsel %vm1501_vm0, %v4446_v47, 0.0 }
  0xd6   : > { %v2600_v17 = vpop.eup %2599  ;;  %2619 = vpow2.f32 %v2378_v32  ;;  %v4472_v22 = vadd.f32 %v4173_v1, %v4376_v0  ;;  %v1391_v5 = vadd.f32 1.0, %v2596_v6  ;;  %v2381_v49 = vmul.f32 -1.442695, %v4452_v63 }
  0xd7   : > { %v2602_v36 = vpop.eup %2601  ;;  %2621 = vrcp.f32 %v1389_v52  ;;  %v1514_v31 = vadd.f32 %v1513_v48, %v1512_v44  ;;  %v4476_v40 = vmul.f32 %v2598_v54, %v4269_v25  ;;  %v1517_v37 = vsel %vm1501_vm0, %v4456_v33, 0.0 }
  0xd8   : > { %v2604_v9 = vpop.eup %2603  ;;  %2623 = vpow2.f32 %v2379_v23  ;;  %v4482_v7 = vadd.f32 %v4173_v1, %v4379_v11  ;;  %v1392_v0 = vadd.f32 1.0, %v2600_v17  ;;  %v2382_v57 = vmul.f32 -1.442695, %v4462_v4 }
  0xd9   : > { %v2606_v2 = vpop.eup %2605  ;;  %2625 = vrcp.f32 %v1390_v20  ;;  %v1516_v55 = vadd.f32 %v1515_v38, %v1514_v31  ;;  %v4486_v41 = vmul.f32 %v2602_v36, %v5199_v42  ;;  %v1519_v25 = vsel %vm1501_vm0, %v4466_v43, 0.0 }
  0xda   : > { %v2608_v59 = vpop.eup %2607  ;;  %2627 = vpow2.f32 %v2380_v16  ;;  %v4492_v24 = vadd.f32 %v4173_v1, %v4389_v29  ;;  %v1393_v11 = vadd.f32 1.0, %v2604_v9  ;;  %v2383_v21 = vmul.f32 -1.442695, %v4472_v22  ;;  %v5201_v29 = vld [vmem:[#allocation41_spill] sm:$0xff]  ;;  %v5202_v16 = vld [vmem:[#allocation43_spill] sm:$0xff] }
  0xdb   : > { %v2610_v30 = vpop.eup %2609  ;;  %2629 = vrcp.f32 %v1391_v5  ;;  %v1518_v8 = vadd.f32 %v1517_v37, %v1516_v55  ;;  %v4496_v39 = vmul.f32 %v2606_v2, %v5200_v13  ;;  %v1521_v32 = vsel %vm1501_vm0, %v4476_v40, 0.0  ;;  %v5203_v37 = vld [vmem:[#allocation44_spill] sm:$0xff] }
  0xdc   : > { %v2612_v19 = vpop.eup %2611  ;;  %2631 = vpow2.f32 %v2381_v49  ;;  %v1394_v60 = vadd.f32 1.0, %v2608_v59  ;;  %v2384_v1 = vmul.f32 -1.442695, %v4482_v7  ;;  %v4502_v6 = vmul.f32 %v2610_v30, %v5201_v29 }
  0xdd   : > { %v2614_v56 = vpop.eup %2613  ;;  %2633 = vrcp.f32 %v1392_v0  ;;  %v1520_v52 = vadd.f32 %v1519_v25, %v1518_v8  ;;  %v1523_v23 = vsel %vm1501_vm0, %v4486_v41, 0.0  ;;  %v1395_v54 = vadd.f32 1.0, %v2612_v19 }
  0xde   : > { %v2616_v27 = vpop.eup %2615  ;;  %2635 = vpow2.f32 %v2382_v57  ;;  %v2385_v17 = vmul.f32 -1.442695, %v4492_v24  ;;  %v4508_v38 = vmul.f32 %v2614_v56, %v5202_v16  ;;  %v1525_v36 = vsel %vm1501_vm0, %v4496_v39, 0.0 }
  0xdf   : > { %v2618_v48 = vpop.eup %2617  ;;  %2637 = vrcp.f32 %v1393_v11  ;;  %v1522_v20 = vadd.f32 %v1521_v32, %v1520_v52  ;;  %v1396_v31 = vadd.f32 1.0, %v2616_v27  ;;  %v1527_v0 = vsel %vm1501_vm0, %v4502_v6, 0.0 }
  0xe0   : > { %v2620_v44 = vpop.eup %2619  ;;  %2639 = vpow2.f32 %v2383_v21  ;;  %v4513_v2 = vmul.f32 %v2618_v48, %v5203_v37  ;;  %v1529_v30 = vsel %vm1501_vm0, %v4508_v38, 0.0 }
  0xe1   : > { %v2622_v5 = vpop.eup %2621  ;;  %2641 = vrcp.f32 %v1394_v60  ;;  %v1524_v9 = vadd.f32 %v1523_v23, %v1522_v20  ;;  %v1397_v59 = vadd.f32 1.0, %v2620_v44 }
  0xe2   : > { %v2624_v49 = vpop.eup %2623  ;;  %2643 = vpow2.f32 %v2384_v1  ;;  %v4518_v25 = vmul.f32 %v2622_v5, %v4345_v53  ;;  %v1531_v32 = vsel %vm1501_vm0, %v4513_v2, 0.0 }
  0xe3   : > { %v2626_v55 = vpop.eup %2625  ;;  %2645 = vrcp.f32 %v1395_v54  ;;  %v1526_v57 = vadd.f32 %v1525_v36, %v1524_v9  ;;  %v1398_v8 = vadd.f32 1.0, %v2624_v49 }
  0xe4   : > { %v2628_v42 = vpop.eup %2627  ;;  %2647 = vpow2.f32 %v2385_v17  ;;  %v4523_v13 = vmul.f32 %v2626_v55, %v4351_v58  ;;  %v1533_v1 = vsel %vm1501_vm0, %v4518_v25, 0.0 }
  0xe5   : > { %v2630_v11 = vpop.eup %2629  ;;  %2649 = vrcp.f32 %v1396_v31  ;;  %v1528_v19 = vadd.f32 %v1527_v0, %v1526_v57  ;;  %v1399_v60 = vadd.f32 1.0, %v2628_v42 }
  0xe6   : > { %v2632_v21 = vpop.eup %2631  ;;  %2651 = vrcp.f32 %v1397_v59  ;;  %v4528_v27 = vmul.f32 %v2630_v11, %v4359_v51  ;;  %v1535_v20 = vsel %vm1501_vm0, %v4523_v13, 0.0 }
  0xe7   : > { %v2634_v56 = vpop.eup %2633  ;;  %v1530_v52 = vadd.f32 %v1529_v30, %v1528_v19  ;;  %v1400_v23 = vadd.f32 1.0, %v2632_v21  ;;  %2653 = vrcp.f32 %v1398_v8 }
  0xe8   : > { %v2636_v53 = vpop.eup %2635  ;;  %v4533_v54 = vmul.f32 %v2634_v56, %v4372_v61  ;;  %2655 = vrcp.f32 %v1399_v60  ;;  %v1537_v5 = vsel %vm1501_vm0, %v4528_v27, 0.0 }
  0xe9   : > { %v2638_v29 = vpop.eup %2637  ;;  %v1532_v48 = vadd.f32 %v1531_v32, %v1530_v52  ;;  %v1401_v17 = vadd.f32 1.0, %v2636_v53  ;;  %2657 = vrcp.f32 %v1400_v23 }
  0xea   : > { %v2640_v58 = vpop.eup %2639  ;;  %v4538_v36 = vmul.f32 %v2638_v29, %v4382_v3  ;;  %v1539_v0 = vsel %vm1501_vm0, %v4533_v54, 0.0 }
  0xeb   : > { %v2642_v44 = vpop.eup %2641  ;;  %v1534_v16 = vadd.f32 %v1533_v1, %v1532_v48  ;;  %v1402_v9 = vadd.f32 1.0, %v2640_v58  ;;  %2659 = vrcp.f32 %v1401_v17 }
  0xec   : > { %v2644_v51 = vpop.eup %2643  ;;  %v4543_v37 = vmul.f32 %v2642_v44, %v4385_v28  ;;  %v1541_v42 = vsel %vm1501_vm0, %v4538_v36, 0.0 }
  0xed   : > { %v2646_v31 = vpop.eup %2645  ;;  %v1536_v49 = vadd.f32 %v1535_v20, %v1534_v16  ;;  %v1403_v59 = vadd.f32 1.0, %v2644_v51  ;;  %2661 = vrcp.f32 %v1402_v9 }
  0xee   : > { %v2648_v61 = vpop.eup %2647  ;;  %v4548_v3 = vmul.f32 %v2646_v31, %v4392_v15  ;;  %v1543_v19 = vsel %vm1501_vm0, %v4543_v37, 0.0 }
  0xef   : > { %v2650_v55 = vpop.eup %2649  ;;  %v1538_v57 = vadd.f32 %v1537_v5, %v1536_v49  ;;  %v1404_v11 = vadd.f32 1.0, %v2648_v61  ;;  %2663 = vrcp.f32 %v1403_v59 }
  0xf0   : > { %v2652_v30 = vpop.eup %2651  ;;  %v4553_v28 = vmul.f32 %v2650_v55, %v4395_v46  ;;  %v1545_v15 = vsel %vm1501_vm0, %v4548_v3, 0.0 }
  0xf1   : > { %v1540_v8 = vadd.f32 %v1539_v0, %v1538_v57  ;;  %v2654_v21 = vpop.eup %2653  ;;  %v4558_v56 = vmul.f32 %v2652_v30, %v4399_v34  ;;  %2665 = vrcp.f32 %v1404_v11 }
  0xf2   : > { %v2656_v60 = vpop.eup %2655  ;;  %v4563_v53 = vmul.f32 %v2654_v21, %v4432_v45  ;;  %v1547_v46 = vsel %vm1501_vm0, %v4553_v28, 0.0 }
  0xf3   : > { %v1542_v32 = vadd.f32 %v1541_v42, %v1540_v8  ;;  %v2658_v1 = vpop.eup %2657  ;;  %v4568_v23 = vmul.f32 %v2656_v60, %v4442_v18  ;;  %v1549_v34 = vsel %vm1501_vm0, %v4558_v56, 0.0  ;;  %v1573_v60 = vld [vmem:[%s4776_s3] sm:$0xff] }
  0xf4   : > { %v4573_v20 = vmul.f32 %v2658_v1, %v4452_v63  ;;  %v1551_v45 = vsel %vm1501_vm0, %v4563_v53, 0.0 }
  0xf5   : > { %v1544_v52 = vadd.f32 %v1543_v19, %v1542_v32  ;;  %v2660_v48 = vpop.eup %2659  ;;  %v1553_v18 = vsel %vm1501_vm0, %v4568_v23, 0.0 }
  0xf6   : > { %v4578_v16 = vmul.f32 %v2660_v48, %v4462_v4  ;;  %v1555_v63 = vsel %vm1501_vm0, %v4573_v20, 0.0 }
  0xf7   : > { %v1546_v29 = vadd.f32 %v1545_v15, %v1544_v52  ;;  %v2662_v44 = vpop.eup %2661 }
  0xf8   : > { %v4583_v31 = vmul.f32 %v2662_v44, %v4472_v22  ;;  %v1557_v4 = vsel %vm1501_vm0, %v4578_v16, 0.0 }
  0xf9   : > { %v1548_v58 = vadd.f32 %v1547_v46, %v1546_v29  ;;  %v2664_v51 = vpop.eup %2663  ;;  %v2715_v29 = vmov 0  }
  0xfa   : > { %v4588_v61 = vmul.f32 %v2664_v51, %v4482_v7  ;;  %v1559_v59 = vsel %vm1501_vm0, %v4583_v31, 0.0  ;;  %2538 = vset.pattern.permute.xlu0 %v2715_v29 }
  0xfb   : > { %v1550_v17 = vadd.f32 %v1549_v34, %v1548_v58  ;;  %v2666_v9 = vpop.eup %2665  ;;  %v1578_v34 = vld [vmem:[%s4777_s4] sm:$0xff] }
  0xfc   : > { %v4593_v55 = vmul.f32 %v2666_v9, %v4492_v24  ;;  %v1561_v57 = vsel %vm1501_vm0, %v4588_v61, 0.0 }
  0xfd   : > { %v1552_v5 = vadd.f32 %v1551_v45, %v1550_v17 }
  0xfe   : > { %v1563_v30 = vsel %vm1501_vm0, %v4593_v55, 0.0 }
  0xff   : > { %v1554_v49 = vadd.f32 %v1553_v18, %v1552_v5  ;;  %v1645_v5 = vld [vmem:[%s4780_s7] sm:$0xff] }
 0x101   : > { %v1556_v0 = vadd.f32 %v1555_v63, %v1554_v49  ;;  %v1646_v63 = vld [vmem:[%s4780_s7 + $0x8] sm:$0xff]  ;;  %v1647_v49 = vld [vmem:[%s4780_s7 + $0x10] sm:$0xff] }
 0x102   : > { %v2516_v9 = vpack.c.bf16 %v1646_v63, %v1645_v5 }
 0x103   : > { %v1558_v22 = vadd.f32 %v1557_v4, %v1556_v0  ;;  %v1648_v4 = vld [vmem:[%s4780_s7 + $0x18] sm:$0xff] }
 0x104   : > { %2517 = vmatprep.subr.bf16.mxu0 %v2516_v9  ;;  %2524 = vmatprep.subr.bf16.mxu1 %v2516_v9  ;;  %v2520_v0 = vpack.c.bf16 %v1648_v4, %v1647_v49  ;;  %v2675_v49 = vld [vmem:[%s2780_s14 + $0xd9] sm:$0xff] }
 0x105   : > { %v1560_v42 = vadd.f32 %v1559_v59, %v1558_v22  ;;  %2519 = vmatpush3.bf16.msra.mxu0 %v2516_v9  ;;  %2526 = vmatpush3.bf16.msra.mxu1 %v2516_v9  ;;  %v1587_v59 = vld [vmem:[%s4778_s5] sm:$0xff] }
 0x106   : > { %2521 = vmatprep.subr.bf16.mxu0 %v2520_v0  ;;  %2525 = vmatprep.subr.bf16.mxu1 %v2520_v0 }
 0x107   : > { %v1562_v7 = vadd.f32 %v1561_v57, %v1560_v42 }
 0x109   : > { %v1564_v11 = vadd.f32 %v1563_v30, %v1562_v7  ;;  %2523 = vmatpush3.bf16.msra.mxu0 %v2520_v0  ;;  %2527 = vmatpush3.bf16.msra.mxu1 %v2520_v0 }
 0x10b   : > { %v1565_v8 = vrot.slane %v1564_v11, 4 }
 0x10d   : > { %v1566_v19 = vadd.f32 %v1565_v8, %v1564_v11 }
 0x10f   : > { %v1567_v21 = vrot.slane %v1566_v19, 2 }
 0x111   : > { %v1568_v32 = vadd.f32 %v1567_v21, %v1566_v19  ;;  %v1601_v21 = vld [vmem:[%s4779_s6] sm:$0x1] }
 0x113   : > { %v1569_v15 = vrot.slane %v1568_v32, 1 }
 0x115   : > { %v1570_v24 = vadd.f32 %v1569_v15, %v1568_v32 }
 0x117   : > { %v1572_v52 = vmul.f32 0.00390625, %v1570_v24 }
 0x119   : > { %v1574_v46 = vmul.f32 %v1573_v60, %v1572_v52 }
 0x11b   : > { %v1575_v1 = vsel %vm1501_vm0, %v1574_v46, 0.0  ;;  %v1609_v46 = vlaneseq }
 0x11c   : > { %1576 = vadd.xlane.f32.xlu0 %v1575_v1 }
 0x11d   : > { %v1610_v1 = vshrl.u32 %v1609_v46, 7 }
 0x11f   : > { %v1611_v29 = vsub.s32 0, %v1610_v1 }
 0x1a9   : > { %v1577_v48 = vpop.xlane.xlu0 %1576 }
 0x1aa   : > { %v1579_v58 = vadd.f32 %v1578_v34, %v1577_v48 }
 0x1ac   : > { %v2386_v45 = vmul.f32 -1.442695, %v1579_v58 }
 0x1ae   : > { %2667 = vpow2.f32 %v2386_v45 }
 0x1b8   : > { %v2668_v44 = vpop.eup %2667 }
 0x1b9   : > { %v1583_v17 = vadd.f32 1.0, %v2668_v44 }
 0x1bb   : > { %2669 = vrcp.f32 %v1583_v17 }
 0x1c5   : > { %v2670_v18 = vpop.eup %2669 }
 0x1c6   : > { %v1586_v51 = vmul.f32 %v2670_v18, %v1579_v58 }
 0x1c8   : > { %1590 = vperm.xlu0 %2538, %v1586_v51  }
 0x247   : > { %v1591_v22 = vpop.permute.xlu0 %1590 }
 0x248   : > { %v1593_v57 = vmul.f32 %v1591_v22, %v1587_v59  ;;  %v2676_v22 = vld [vmem:[%s2780_s14 + $0x19] sm:$0xff] }
 0x24a   : > { %v1594_v42 = vsel %vm1501_vm0, %v1593_v57, 0.0 }
 0x24b   : > { %v1595_v30 = vrot.slane %v1594_v42, 4 }
 0x24d   : > { %v1596_v7 = vadd.f32 %v1595_v30, %v1594_v42 }
 0x24f   : > { %v1597_v11 = vrot.slane %v1596_v7, 2 }
 0x251   : > { %v1598_v8 = vadd.f32 %v1597_v11, %v1596_v7  ;;  %v2677_v7 = vld [vmem:[%s2780_s14 + $0xe1] sm:$0xff] }
 0x253   : > { %v1599_v19 = vrot.slane %v1598_v8, 1 }
 0x255   : > { %v1600_v32 = vadd.f32 %v1599_v19, %v1598_v8 }
 0x257   : > { %v1602_v15 = vadd.f32 %v1601_v21, %v1600_v32 }
 0x259   : > { %v2387_v24 = vmul.f32 -1.442695, %v1602_v15  ;;  %v2678_v15 = vld [vmem:[%s2780_s14 + $0x21] sm:$0xff] }
 0x25b   : > { %2671 = vpow2.f32 %v2387_v24 }
 0x265   : > { %v2672_v60 = vpop.eup %2671 }
 0x266   : > { %v1606_v52 = vadd.f32 1.0, %v2672_v60 }
 0x268   : > { %2673 = vrcp.f32 %v1606_v52 }
 0x272   : > { %v2674_v34 = vpop.eup %2673 }
 0x273   : > { %v1612_v48 = vrot.slane %v2674_v34, %v1611_v29  ;;  %v2679_v29 = vld [vmem:[%s2780_s14 + $0xf1] sm:$0xff] }
 0x275   : > { %v1613_v58 = vmul.f32 %v1612_v48, %v4402_v12  ;;  %v1629_v45 = vmul.f32 %v1612_v48, %v4518_v25  ;;  %v1614_v44 = vmul.f32 %v1612_v48, %v4407_v10  ;;  %v1630_v17 = vmul.f32 %v1612_v48, %v4523_v13 }
 0x276   : > { %v1615_v18 = vmul.f32 %v1612_v48, %v4410_v14  ;;  %v1631_v51 = vmul.f32 %v1612_v48, %v4528_v27  ;;  %v1616_v12 = vmul.f32 %v1612_v48, %v4415_v35  ;;  %v1632_v10 = vmul.f32 %v1612_v48, %v4533_v54 }
 0x277   : > { %2468 = vmatprep.mubr.msk.f32.mxu0 %vm1501_vm0, %v1613_v58  ;;  %2492 = vmatprep.mubr.msk.f32.mxu1 %vm1501_vm0, %v1629_v45  ;;  %v1617_v25 = vmul.f32 %v1612_v48, %v4420_v62  ;;  %v1633_v13 = vmul.f32 %v1612_v48, %v4538_v36  ;;  %v1618_v14 = vmul.f32 %v1612_v48, %v4426_v26  ;;  %v2680_v45 = vld [vmem:[%s2780_s14 + $0x31] sm:$0xff] }
 0x278   : > { %2469 = vmatmul.mubr.msk.f32.vlgmr.msra.gmra.mrb[0].mxu0 %vm1501_vm0, %v1614_v44  ;;  %2493 = vmatmul.mubr.msk.f32.vlgmr.msra.gmra.mrb[0].mxu1 %vm1501_vm0, %v1630_v17  ;;  %v1634_v27 = vmul.f32 %v1612_v48, %v4543_v37  ;;  %v1619_v35 = vmul.f32 %v1612_v48, %v4436_v50  ;;  %v1635_v54 = vmul.f32 %v1612_v48, %v4548_v3 }
 0x279   : > { %2471 = vmatprep.mubr.msk.f32.mxu0 %vm1501_vm0, %v1615_v18  ;;  %2495 = vmatprep.mubr.msk.f32.mxu1 %vm1501_vm0, %v1631_v51  ;;  %v1620_v62 = vmul.f32 %v1612_v48, %v4446_v47  ;;  %v1636_v36 = vmul.f32 %v1612_v48, %v4553_v28  ;;  %v1621_v26 = vmul.f32 %v1612_v48, %v4456_v33  ;;  %v2681_v51 = vld [vmem:[%s2780_s14 + $0xf9] sm:$0xff] }
 0x27a   : > { %v1637_v37 = vmul.f32 %v1612_v48, %v4558_v56  ;;  %v1622_v50 = vmul.f32 %v1612_v48, %v4466_v43  ;;  %v1638_v3 = vmul.f32 %v1612_v48, %v4563_v53  ;;  %v1623_v47 = vmul.f32 %v1612_v48, %v4476_v40 }
 0x27b   : > { %v1639_v28 = vmul.f32 %v1612_v48, %v4568_v23  ;;  %v1624_v33 = vmul.f32 %v1612_v48, %v4486_v41  ;;  %v1640_v56 = vmul.f32 %v1612_v48, %v4573_v20  ;;  %v1625_v43 = vmul.f32 %v1612_v48, %v4496_v39 }
 0x27c   : > { %2472 = vmatmul.mubr.msk.f32.gmra.mrb[2].mxu0 %vm1501_vm0, %v1616_v12  ;;  %2496 = vmatmul.mubr.msk.f32.gmra.mrb[2].mxu1 %vm1501_vm0, %v1632_v10  ;;  %v1641_v53 = vmul.f32 %v1612_v48, %v4578_v16  ;;  %v1626_v40 = vmul.f32 %v1612_v48, %v4502_v6  ;;  %v1642_v23 = vmul.f32 %v1612_v48, %v4583_v31  ;;  %v4694_v6 = vld [vmem:[%s4781_s8] ss:$0 sm:$0xff] }
 0x27d   : > { %2474 = vmatprep.mubr.msk.f32.mxu0 %vm1501_vm0, %v1617_v25  ;;  %2498 = vmatprep.mubr.msk.f32.mxu1 %vm1501_vm0, %v1633_v13  ;;  %v1627_v41 = vmul.f32 %v1612_v48, %v4508_v38  ;;  %v1643_v20 = vmul.f32 %v1612_v48, %v4588_v61  ;;  %v1628_v39 = vmul.f32 %v1612_v48, %v4513_v2 }
 0x27e   : > { %v1644_v16 = vmul.f32 %v1612_v48, %v4593_v55 }
 0x280   : > { %2475 = vmatmul.mubr.msk.f32.gmra.mrb[4].mxu0 %vm1501_vm0, %v1618_v14  ;;  %2499 = vmatmul.mubr.msk.f32.gmra.mrb[4].mxu1 %vm1501_vm0, %v1634_v27  ;;  %v2682_v27 = vld [vmem:[%s2780_s14 + $0x39] sm:$0xff] }
 0x281   : > { %2477 = vmatprep.mubr.msk.f32.mxu0 %vm1501_vm0, %v1619_v35  ;;  %2501 = vmatprep.mubr.msk.f32.mxu1 %vm1501_vm0, %v1635_v54 }
 0x284   : > { %2478 = vmatmul.mubr.msk.f32.gmra.mrb[6].mxu0 %vm1501_vm0, %v1620_v62  ;;  %2502 = vmatmul.mubr.msk.f32.gmra.mrb[6].mxu1 %vm1501_vm0, %v1636_v36 }
 0x285   : > { %2480 = vmatprep.mubr.msk.f32.mxu0 %vm1501_vm0, %v1621_v26  ;;  %2504 = vmatprep.mubr.msk.f32.mxu1 %vm1501_vm0, %v1637_v37  ;;  %v2683_v37 = vld [vmem:[%s2780_s14 + $0x109] sm:$0xff] }
 0x288   : > { %2481 = vmatmul.mubr.msk.f32.gmra.mrb[8].mxu0 %vm1501_vm0, %v1622_v50  ;;  %2505 = vmatmul.mubr.msk.f32.gmra.mrb[8].mxu1 %vm1501_vm0, %v1638_v3 }
 0x289   : > { %2483 = vmatprep.mubr.msk.f32.mxu0 %vm1501_vm0, %v1623_v47  ;;  %2507 = vmatprep.mubr.msk.f32.mxu1 %vm1501_vm0, %v1639_v28  ;;  %v2684_v28 = vld [vmem:[%s2780_s14 + $0x49] sm:$0xff] }
 0x28c   : > { %2484 = vmatmul.mubr.msk.f32.gmra.mrb[10].mxu0 %vm1501_vm0, %v1624_v33  ;;  %2508 = vmatmul.mubr.msk.f32.gmra.mrb[10].mxu1 %vm1501_vm0, %v1640_v56 }
 0x28d   : > { %2486 = vmatprep.mubr.msk.f32.mxu0 %vm1501_vm0, %v1625_v43  ;;  %2510 = vmatprep.mubr.msk.f32.mxu1 %vm1501_vm0, %v1641_v53  ;;  %v2685_v53 = vld [vmem:[%s2780_s14 + $0x111] sm:$0xff] }
 0x290   : > { %2487 = vmatmul.mubr.msk.f32.gmra.mrb[12].mxu0 %vm1501_vm0, %v1626_v40  ;;  %2511 = vmatmul.mubr.msk.f32.gmra.mrb[12].mxu1 %vm1501_vm0, %v1642_v23 }
 0x291   : > { %2489 = vmatprep.mubr.msk.f32.mxu0 %vm1501_vm0, %v1627_v41  ;;  %2513 = vmatprep.mubr.msk.f32.mxu1 %vm1501_vm0, %v1643_v20 }
 0x294   : > { %2490 = vmatmul.mubr.msk.f32.gmra.mrb[14].mxu0 %vm1501_vm0, %v1628_v39  ;;  %2514 = vmatmul.mubr.msk.f32.gmra.mrb[14].mxu1 %vm1501_vm0, %v1644_v16  ;;  %v2686_v16 = vld [vmem:[%s2780_s14 + $0x51] sm:$0xff] }
 0x34b   : > { %v2470_v38 = vpop.f32.mrb[0].mxu0  ;;  %v2494_v31 = vpop.f32.mrb[0].mxu1 }
 0x34c   : > { %v1818_v61 = vpop.f32.mrb[1].mxu0  ;;  %v1898_v5 = vpop.f32.mrb[1].mxu1  ;;  %v1824_v55 = vadd.f32 %v2470_v38, %v4694_v6  ;;  %v1904_v9 = vadd.f32 %v2494_v31, %v4694_v6 }
 0x34d   : > { %v1819_v63 = vadd.f32 %v4694_v6, %v1818_v61  ;;  %v1899_v2 = vadd.f32 %v4694_v6, %v1898_v5 }
 0x34e   : > { %v1994_v11 = vadd.f32 %v2677_v7, %v1904_v9  ;;  %v1978_v24 = vadd.f32 %v2678_v15, %v1824_v55 }
 0x34f   : > { %v1993_v4 = vadd.f32 %v2675_v49, %v1899_v2  ;;  %v2473_v0 = vpop.f32.mrb[2].mxu0  ;;  %v2497_v59 = vpop.f32.mrb[2].mxu1  ;;  %v1977_v57 = vadd.f32 %v2676_v22, %v1819_v63  ;;  %v2687_v2 = vld [vmem:[%s2780_s14 + $0x121] sm:$0xff] }
 0x350   : > { %v1828_v42 = vpop.f32.mrb[3].mxu0  ;;  %v1908_v30 = vpop.f32.mrb[3].mxu1  ;;  %v1834_v46 = vadd.f32 %v2473_v0, %v4694_v6  ;;  %v1914_v1 = vadd.f32 %v2497_v59, %v4694_v6 }
 0x351   : > { %2041 = vxpose.xlu0.b32.start [1/16] (narrow) %v1993_v4, 32  ;;  %2009 = vxpose.xlu1.b32.start [1/16] (narrow) %v1977_v57, 32  ;;  %v1829_v8 = vadd.f32 %v4694_v6, %v1828_v42  ;;  %v1909_v19 = vadd.f32 %v4694_v6, %v1908_v30  ;;  %v2688_v4 = vld [vmem:[%s2780_s14 + $0x61] sm:$0xff]  ;;  %v2689_v57 = vld [vmem:[%s2780_s14 + $0x129] sm:$0xff] }
 0x352   : > { %v1996_v12 = vadd.f32 %v2681_v51, %v1914_v1  ;;  %v1980_v35 = vadd.f32 %v2682_v27, %v1834_v46 }
 0x353   : > { %v2476_v21 = vpop.f32.mrb[4].mxu0  ;;  %v2500_v32 = vpop.f32.mrb[4].mxu1  ;;  %v1995_v34 = vadd.f32 %v2679_v29, %v1909_v19  ;;  %v1979_v44 = vadd.f32 %v2680_v45, %v1829_v8 }
 0x354   : > { %v1838_v60 = vpop.f32.mrb[5].mxu0  ;;  %v1918_v52 = vpop.f32.mrb[5].mxu1  ;;  %v1844_v36 = vadd.f32 %v2476_v21, %v4694_v6  ;;  %v1924_v26 = vadd.f32 %v2500_v32, %v4694_v6  ;;  %v2691_v32 = vld [vmem:[%s2780_s14 + $0x139] sm:$0xff] }
 0x355   : > { %2042 = vxpose.xlu0.b32.cont [2/16] (narrow) %v1994_v11, 32  ;;  %2010 = vxpose.xlu1.b32.cont [2/16] (narrow) %v1978_v24, 32  ;;  %v1839_v10 = vadd.f32 %v4694_v6, %v1838_v60  ;;  %v1919_v25 = vadd.f32 %v4694_v6, %v1918_v52  ;;  %v2690_v11 = vld [vmem:[%s2780_s14 + $0x69] sm:$0xff]  ;;  %v2692_v24 = vld [vmem:[%s2780_s14 + $0x79] sm:$0xff]  ;;  %v2693_v52 = vld [vmem:[%s2780_s14 + $0x141] sm:$0xff] }
 0x356   : > { %v1998_v40 = vadd.f32 %v2685_v53, %v1924_v26  ;;  %v1982_v38 = vadd.f32 %v2686_v16, %v1844_v36  ;;  %v2700_v26 = vld [vmem:[%s2780_s14 + $0xa9] sm:$0xff] }
 0x357   : > { %v2479_v48 = vpop.f32.mrb[6].mxu0  ;;  %v2503_v58 = vpop.f32.mrb[6].mxu1  ;;  %v1997_v50 = vadd.f32 %v2683_v37, %v1919_v25  ;;  %v1981_v33 = vadd.f32 %v2684_v28, %v1839_v10 }
 0x358   : > { %v1848_v17 = vpop.f32.mrb[7].mxu0  ;;  %v1928_v18 = vpop.f32.mrb[7].mxu1  ;;  %v1854_v5 = vadd.f32 %v2479_v48, %v4694_v6  ;;  %v1934_v63 = vadd.f32 %v2503_v58, %v4694_v6 }
 0x359   : > { %2043 = vxpose.xlu0.b32.cont [3/16] (narrow) %v1995_v34, 32  ;;  %2011 = vxpose.xlu1.b32.cont [3/16] (narrow) %v1979_v44, 32  ;;  %v1849_v23 = vadd.f32 %v4694_v6, %v1848_v17  ;;  %v1929_v41 = vadd.f32 %v4694_v6, %v1928_v18  ;;  %v2694_v34 = vld [vmem:[%s2780_s14 + $0x81] sm:$0xff]  ;;  %v2695_v44 = vld [vmem:[%s2780_s14 + $0x151] sm:$0xff] }
 0x35a   : > { %v2000_v42 = vadd.f32 %v2689_v57, %v1934_v63  ;;  %v1984_v8 = vadd.f32 %v2690_v11, %v1854_v5  ;;  %v2696_v18 = vld [vmem:[%s2780_s14 + $0x91] sm:$0xff] }
 0x35b   : > { %v2482_v13 = vpop.f32.mrb[8].mxu0  ;;  %v2506_v14 = vpop.f32.mrb[8].mxu1  ;;  %v1999_v55 = vadd.f32 %v2687_v2, %v1929_v41  ;;  %v1983_v0 = vadd.f32 %v2688_v4, %v1849_v23  ;;  %v2704_v41 = vld [vmem:[%s2780_s14 + $0xc1] sm:$0xff] }
 0x35c   : > { %v1858_v54 = vpop.f32.mrb[9].mxu0  ;;  %v1938_v62 = vpop.f32.mrb[9].mxu1  ;;  %v1864_v19 = vadd.f32 %v2482_v13, %v4694_v6  ;;  %v1944_v21 = vadd.f32 %v2506_v14, %v4694_v6  ;;  %v2698_v14 = vld [vmem:[%s2780_s14 + $0x99] sm:$0xff] }
 0x35d   : > { %2044 = vxpose.xlu0.b32.cont [4/16] (narrow) %v1996_v12, 32  ;;  %2012 = vxpose.xlu1.b32.cont [4/16] (narrow) %v1980_v35, 32  ;;  %v1859_v30 = vadd.f32 %v4694_v6, %v1858_v54  ;;  %v1939_v7 = vadd.f32 %v4694_v6, %v1938_v62  ;;  %v2697_v12 = vld [vmem:[%s2780_s14 + $0x159] sm:$0xff]  ;;  %v2699_v62 = vld [vmem:[%s2780_s14 + $0x169] sm:$0xff] }
 0x35e   : > { %v2002_v46 = vadd.f32 %v2693_v52, %v1944_v21  ;;  %v1986_v48 = vadd.f32 %v2694_v34, %v1864_v19 }
 0x35f   : > { %v2485_v3 = vpop.f32.mrb[10].mxu0  ;;  %v2509_v47 = vpop.f32.mrb[10].mxu1  ;;  %v2001_v15 = vadd.f32 %v2691_v32, %v1939_v7  ;;  %v1985_v60 = vadd.f32 %v2692_v24, %v1859_v30 }
 0x360   : > { %v1868_v56 = vpop.f32.mrb[11].mxu0  ;;  %v1948_v43 = vpop.f32.mrb[11].mxu1  ;;  %v1874_v58 = vadd.f32 %v2485_v3, %v4694_v6  ;;  %v1954_v45 = vadd.f32 %v2509_v47, %v4694_v6 }
 0x361   : > { %2045 = vxpose.xlu0.b32.cont [5/16] (narrow) %v1997_v50, 32  ;;  %2013 = vxpose.xlu1.b32.cont [5/16] (narrow) %v1981_v33, 32  ;;  %v1869_v1 = vadd.f32 %v4694_v6, %v1868_v56  ;;  %v1949_v29 = vadd.f32 %v4694_v6, %v1948_v43  ;;  %v2701_v50 = vld [vmem:[%s2780_s14 + $0x171] sm:$0xff] }
 0x362   : > { %v2004_v10 = vadd.f32 %v2697_v12, %v1954_v45  ;;  %v1988_v27 = vadd.f32 %v2698_v14, %v1874_v58  ;;  %v2702_v33 = vld [vmem:[%s2780_s14 + $0xb1] sm:$0xff] }
 0x363   : > { %v2488_v20 = vpop.f32.mrb[12].mxu0  ;;  %v2512_v39 = vpop.f32.mrb[12].mxu1  ;;  %v2003_v17 = vadd.f32 %v2695_v44, %v1949_v29  ;;  %v1987_v51 = vadd.f32 %v2696_v18, %v1869_v1 }
 0x364   : > { %v1878_v31 = vpop.f32.mrb[13].mxu0  ;;  %v1958_v61 = vpop.f32.mrb[13].mxu1  ;;  %v1884_v35 = vadd.f32 %v2488_v20, %v4694_v6  ;;  %v1964_v54 = vadd.f32 %v2512_v39, %v4694_v6  ;;  %v2705_v39 = vld [vmem:[%s2780_s14 + $0x189] sm:$0xff] }
 0x365   : > { %2046 = vxpose.xlu0.b32.cont [6/16] (narrow) %v1998_v40, 32  ;;  %2014 = vxpose.xlu1.b32.cont [6/16] (narrow) %v1982_v38, 32  ;;  %v1879_v25 = vadd.f32 %v4694_v6, %v1878_v31  ;;  %v1959_v13 = vadd.f32 %v4694_v6, %v1958_v61  ;;  %v2703_v40 = vld [vmem:[%s2780_s14 + $0x181] sm:$0xff]  ;;  %v2706_v38 = vld [vmem:[%s2780_s14 + $0xc9] sm:$0xff] }
 0x366   : > { %v2006_v3 = vadd.f32 %v2701_v50, %v1964_v54  ;;  %v1990_v56 = vadd.f32 %v2702_v33, %v1884_v35 }
 0x367   : > { %v4725_v9 = vpop.f32.mrb[14].mxu0  ;;  %v4727_v49 = vpop.f32.mrb[14].mxu1  ;;  %v2005_v36 = vadd.f32 %v2699_v62, %v1959_v13  ;;  %v1989_v37 = vadd.f32 %v2700_v26, %v1879_v25 }
 0x368   : > { %v1888_v59 = vpop.f32.mrb[15].mxu0  ;;  %v1968_v22 = vpop.f32.mrb[15].mxu1  ;;  %v1894_v43 = vadd.f32 %v4725_v9, %v4694_v6  ;;  %v1974_v53 = vadd.f32 %v4727_v49, %v4694_v6 }
 0x369   : > { %2047 = vxpose.xlu0.b32.cont [7/16] (narrow) %v1999_v55, 32  ;;  %2015 = vxpose.xlu1.b32.cont [7/16] (narrow) %v1983_v0, 32  ;;  %v1889_v47 = vadd.f32 %v4694_v6, %v1888_v59  ;;  %v1969_v28 = vadd.f32 %v4694_v6, %v1968_v22 }
 0x36a   : > { %v2008_v16 = vadd.f32 %v2705_v39, %v1974_v53  ;;  %v1992_v31 = vadd.f32 %v2706_v38, %v1894_v43 }
 0x36b   : > { %v2007_v23 = vadd.f32 %v2703_v40, %v1969_v28  ;;  %v1991_v20 = vadd.f32 %v2704_v41, %v1889_v47 }
 0x36d   : > { %2048 = vxpose.xlu0.b32.cont [8/16] (narrow) %v2000_v42, 32  ;;  %2016 = vxpose.xlu1.b32.cont [8/16] (narrow) %v1984_v8, 32 }
 0x371   : > { %2049 = vxpose.xlu0.b32.cont [9/16] (narrow) %v2001_v15, 32  ;;  %2017 = vxpose.xlu1.b32.cont [9/16] (narrow) %v1985_v60, 32 }
 0x375   : > { %2050 = vxpose.xlu0.b32.cont [10/16] (narrow) %v2002_v46, 32  ;;  %2018 = vxpose.xlu1.b32.cont [10/16] (narrow) %v1986_v48, 32 }
 0x379   : > { %2051 = vxpose.xlu0.b32.cont [11/16] (narrow) %v2003_v17, 32  ;;  %2019 = vxpose.xlu1.b32.cont [11/16] (narrow) %v1987_v51, 32 }
 0x37d   : > { %2052 = vxpose.xlu0.b32.cont [12/16] (narrow) %v2004_v10, 32  ;;  %2020 = vxpose.xlu1.b32.cont [12/16] (narrow) %v1988_v27, 32 }
 0x381   : > { %2053 = vxpose.xlu0.b32.cont [13/16] (narrow) %v2005_v36, 32  ;;  %2021 = vxpose.xlu1.b32.cont [13/16] (narrow) %v1989_v37, 32 }
 0x385   : > { %2054 = vxpose.xlu0.b32.cont [14/16] (narrow) %v2006_v3, 32  ;;  %2022 = vxpose.xlu1.b32.cont [14/16] (narrow) %v1990_v56, 32 }
 0x389   : > { %2055 = vxpose.xlu0.b32.cont [15/16] (narrow) %v2007_v23, 32  ;;  %2023 = vxpose.xlu1.b32.cont [15/16] (narrow) %v1991_v20, 32 }
 0x38d   : > { %2056 = vxpose.xlu0.b32.end [16/16] (narrow) %v2008_v16, 32  ;;  %2024 = vxpose.xlu1.b32.end [16/16] (narrow) %v1992_v31, 32 }
 0x3d1   : > { %v2057_v61 = vpop.trf.xlu0  ;;  %v2025_v5 = vpop.trf.xlu1 }
 0x3d2   : > { %2074 = vst [vmem:[%s332_s20 + $0x8] sm:$0xff] %v2057_v61  ;;  %2073 = vst [vmem:[%s332_s20] sm:$0xff] %v2025_v5 }
 0x3d5   : > { %v2058_v6 = vpop.trf.xlu0  ;;  %v2026_v63 = vpop.trf.xlu1 }
 0x3d6   : > { %2076 = vst [vmem:[%s332_s20 + $0x18] sm:$0xff] %v2058_v6  ;;  %2075 = vst [vmem:[%s332_s20 + $0x10] sm:$0xff] %v2026_v63 }
 0x3d9   : > { %v2059_v2 = vpop.trf.xlu0  ;;  %v2027_v55 = vpop.trf.xlu1 }
 0x3da   : > { %2078 = vst [vmem:[%s332_s20 + $0x28] sm:$0xff] %v2059_v2  ;;  %2077 = vst [vmem:[%s332_s20 + $0x20] sm:$0xff] %v2027_v55 }
 0x3dd   : > { %v2060_v9 = vpop.trf.xlu0  ;;  %v2028_v49 = vpop.trf.xlu1 }
 0x3de   : > { %2080 = vst [vmem:[%s332_s20 + $0x38] sm:$0xff] %v2060_v9  ;;  %2079 = vst [vmem:[%s332_s20 + $0x30] sm:$0xff] %v2028_v49 }
 0x3df PF: > { %s19_s30 = sadd.s32 1, %s2713_s30  }
 0x3e0   : > { %p16_p4 = scmp.ge.s32.totalorder %s19_s30, 4  }
 0x3e2   :  { %18 = sbr.rel (!%p16_p4) target bundleno = 1 (0x1), region = 96 }

</bundles_post_ra>
